<compile_context>
chip_gen: v7x
topology: tpu7x:2x2x1
jax: 0.10.0
libtpu: 0.0.40
codegen_flags: <defaults>
</compile_context>

<pallas_src>
import functools

import jax
import jax.numpy as jnp
from jax.experimental import pallas as pl
from jax.experimental.pallas import tpu as pltpu


# ----------------------------- Pallas kernels -------------------------------

def mhsa_stage_kernel(x_ref, w1_ref, s1_ref, b1_ref, wqkv_ref, bqkv_ref,
                      pos_ref, attn_ref, *, heads, seq):
    """relu(bn1(conv1(x))) -> per-head MHSA; one grid step per batch element.

    x_ref    : (1, L, C_in)        channel-last input slab
    w1_ref   : (C_in, planes)      1x1 conv1 weight
    s1/b1    : (1, planes)         folded BN1 scale / shift
    wqkv_ref : (3*heads, planes, d)  stacked per-head q|k|v weights (q scaled)
    bqkv_ref : (3*heads, 1, d)       stacked per-head q|k|v biases  (q scaled)
    pos_ref  : (d, L)              relative position table (rel_h + rel_w)
    attn_ref : (1, heads*L, d)     raw attention stream in PyTorch memory order
    """
    x = x_ref[0]                                                    # (L, C_in)

    # 1x1 conv + folded BatchNorm + ReLU.
    out1 = jnp.dot(x, w1_ref[...], preferred_element_type=jnp.float32)
    out1 = jnp.maximum(out1 * s1_ref[...] + b1_ref[...], 0.0)       # (L, planes)

    pos = pos_ref[...]                                              # (d, L)
    for h in range(heads):
        # Per-head projections ("q *= scale" folded into the q weights/bias).
        q = jnp.dot(out1, wqkv_ref[h],
                    preferred_element_type=jnp.float32) + bqkv_ref[h]
        k = jnp.dot(out1, wqkv_ref[heads + h],
                    preferred_element_type=jnp.float32) + bqkv_ref[heads + h]
        v = jnp.dot(out1, wqkv_ref[2 * heads + h],
                    preferred_element_type=jnp.float32) + bqkv_ref[2 * heads + h]

        # content_content: einsum('b h d i, b h d j -> b h i j', q, k)
        cc = jax.lax.dot_general(q, k, (((1,), (1,)), ((), ())),
                                 preferred_element_type=jnp.float32)   # (L, L)
        # content_position: einsum('b h d i, d j -> b h i j', q, pos)
        cp = jnp.dot(q, pos, preferred_element_type=jnp.float32)       # (L, L)
        energy = cc + cp

        # softmax(dim=-1); EUP reciprocal instead of a VALU divide.
        m = jnp.max(energy, axis=-1, keepdims=True)
        p = jnp.exp(energy - m)
        beta = p * pl.reciprocal(jnp.sum(p, axis=-1, keepdims=True), approx=True)

        # attention: einsum('b h i j, b h d j -> b h i d', beta, v)
        attn_h = jnp.dot(beta, v, preferred_element_type=jnp.float32)  # (L, d)

        # Store in PyTorch (heads, L, d) row-major order (needed for .view()).
        attn_ref[0, h * seq:(h + 1) * seq, :] = attn_h.astype(attn_ref.dtype)


def output_stage_kernel(attn_ref, x_ref, s2_ref, b2_ref, w3_ref, s3_ref,
                        b3_ref, wd_ref, sd_ref, bd_ref, y_ref):
    """relu(bn2(view)) -> bn3(conv3(.)) + downsample(x) -> relu.

    attn_ref : (1, L, planes)   attention after the PyTorch .view() trick
    x_ref    : (1, L, C_in)     original block input (channel-last)
    y_ref    : (1, L, 4*planes) block output (channel-last)
    """
    af = attn_ref[0]                                                # (L, planes)
    out2 = jnp.maximum(af * s2_ref[...] + b2_ref[...], 0.0)

    out3 = jnp.dot(out2, w3_ref[...], preferred_element_type=jnp.float32)
    out3 = out3 * s3_ref[...] + b3_ref[...]                         # (L, 4p)

    idn = jnp.dot(x_ref[0], wd_ref[...], preferred_element_type=jnp.float32)
    idn = idn * sd_ref[...] + bd_ref[...]                           # (L, 4p)

    y_ref[0] = jnp.maximum(out3 + idn, 0.0).astype(y_ref.dtype)


# ----------------------------- forward pass ----------------------------------

def bottleneck_forward(x, params, heads):
    bsz, c_in, height, width = x.shape
    planes = params["w1"].shape[1]
    d = planes // heads
    seq = height * width
    c_out = params["w3"].shape[1]

    def vrow(v):
        return v.reshape(1, -1).astype(jnp.float32)

    # NCHW -> channel-last (B, L, C_in): one small transpose so channels sit on
    # the 128-lane axis for every matmul.
    xf = jnp.transpose(x.reshape(bsz, c_in, seq), (0, 2, 1))

    grid_params = pltpu.CompilerParams(dimension_semantics=("parallel",))

    # --- Stage A: conv1+bn1+relu + MHSA, fused, grid over batch --------------
    attn_stream = pl.pallas_call(
        functools.partial(mhsa_stage_kernel, heads=heads, seq=seq),
        out_shape=jax.ShapeDtypeStruct((bsz, heads * seq, d), jnp.float32),
        grid=(bsz,),
        in_specs=[
            pl.BlockSpec((1, seq, c_in), lambda b: (b, 0, 0)),
            pl.BlockSpec((c_in, planes), lambda b: (0, 0)),
            pl.BlockSpec((1, planes), lambda b: (0, 0)),
            pl.BlockSpec((1, planes), lambda b: (0, 0)),
            pl.BlockSpec((3 * heads, planes, d), lambda b: (0, 0, 0)),
            pl.BlockSpec((3 * heads, 1, d), lambda b: (0, 0, 0)),
            pl.BlockSpec((d, seq), lambda b: (0, 0)),
        ],
        out_specs=pl.BlockSpec((1, heads * seq, d), lambda b: (b, 0, 0)),
        compiler_params=grid_params,
    )(xf, params["w1"], vrow(params["bn1_s"]), vrow(params["bn1_b"]),
      params["wqkv_h"], params["bqkv_h"], params["pos"])

    # PyTorch `attention.view(x.shape)`: raw row-major reinterpretation of the
    # (B, heads, L, d) stream as NCHW (B, planes, H, W); channel-last here.
    af = jnp.transpose(attn_stream.reshape(bsz, planes, seq), (0, 2, 1))

    # --- Stage B: bn2+relu, conv3+bn3, downsample, residual add+relu ---------
    y = pl.pallas_call(
        output_stage_kernel,
        out_shape=jax.ShapeDtypeStruct((bsz, seq, c_out), jnp.float32),
        grid=(bsz,),
        in_specs=[
            pl.BlockSpec((1, seq, planes), lambda b: (b, 0, 0)),
            pl.BlockSpec((1, seq, c_in), lambda b: (b, 0, 0)),
            pl.BlockSpec((1, planes), lambda b: (0, 0)),
            pl.BlockSpec((1, planes), lambda b: (0, 0)),
            pl.BlockSpec((planes, c_out), lambda b: (0, 0)),
            pl.BlockSpec((1, c_out), lambda b: (0, 0)),
            pl.BlockSpec((1, c_out), lambda b: (0, 0)),
            pl.BlockSpec((c_in, c_out), lambda b: (0, 0)),
            pl.BlockSpec((1, c_out), lambda b: (0, 0)),
            pl.BlockSpec((1, c_out), lambda b: (0, 0)),
        ],
        out_specs=pl.BlockSpec((1, seq, c_out), lambda b: (b, 0, 0)),
        compiler_params=grid_params,
    )(af, xf, vrow(params["bn2_s"]), vrow(params["bn2_b"]),
      params["w3"], vrow(params["bn3_s"]), vrow(params["bn3_b"]),
      params["wd"], vrow(params["bnd_s"]), vrow(params["bnd_b"]))

    # channel-last -> NCHW.
    return jnp.transpose(y, (0, 2, 1)).reshape(bsz, c_out, height, width)


# ----------------------------- parameter setup --------------------------------

def _fold_bn(kg, kb, km, kv, c, eps=1e-5):
    gamma = 1.0 + 0.1 * jax.random.normal(kg, (c,), jnp.float32)
    beta = 0.1 * jax.random.normal(kb, (c,), jnp.float32)
    mean = 0.1 * jax.random.normal(km, (c,), jnp.float32)
    var = 1.0 + 0.1 * jnp.abs(jax.random.normal(kv, (c,), jnp.float32))
    s = gamma / jnp.sqrt(var + eps)
    b = beta - mean * s
    return s, b


def init_params(key, in_planes, planes, heads, height, width):
    expansion = 4
    d = planes // heads
    scale = d ** (-0.5)
    ks = jax.random.split(key, 24)

    def w(k, shape, s=0.1):
        return s * jax.random.normal(k, shape, jnp.float32)

    p = {}
    p["w1"] = w(ks[0], (in_planes, planes))                    # conv1 (bias=False)
    p["bn1_s"], p["bn1_b"] = _fold_bn(ks[1], ks[2], ks[3], ks[4], planes)

    wq = w(ks[5], (planes, planes)); bq = w(ks[6], (planes,))
    wk = w(ks[7], (planes, planes)); bk = w(ks[8], (planes,))
    wv = w(ks[9], (planes, planes)); bv = w(ks[10], (planes,))

    def split_heads(wm, bvec):
        # (planes, planes) columns -> (heads, planes, d) per-head blocks
        return (wm.reshape(planes, heads, d).transpose(1, 0, 2),
                bvec.reshape(heads, 1, d))

    # Fold `q *= scale` into the q projection; stack per-head q|k|v weights so
    # the kernel indexes heads on the leading axis (no lane slicing).
    wq_h, bq_h = split_heads(wq * scale, bq * scale)
    wk_h, bk_h = split_heads(wk, bk)
    wv_h, bv_h = split_heads(wv, bv)
    p["wqkv_h"] = jnp.concatenate([wq_h, wk_h, wv_h], axis=0)  # (3*heads, planes, d)
    p["bqkv_h"] = jnp.concatenate([bq_h, bk_h, bv_h], axis=0)  # (3*heads, 1, d)

    rel_h = jax.random.normal(ks[11], (d, height, 1), jnp.float32) * scale
    rel_w = jax.random.normal(ks[12], (d, 1, width), jnp.float32) * scale
    p["pos"] = (rel_w + rel_h).reshape(d, height * width)      # (d, L)

    p["bn2_s"], p["bn2_b"] = _fold_bn(ks[13], ks[14], ks[15], ks[16], planes)
    p["w3"] = w(ks[17], (planes, expansion * planes))          # conv3 (bias=False)
    p["bn3_s"], p["bn3_b"] = _fold_bn(ks[18], ks[19], ks[20], ks[21], expansion * planes)
    # downsample (s1=True): 1x1 conv + BN
    p["wd"] = w(ks[22], (in_planes, expansion * planes))
    p["bnd_s"], p["bnd_b"] = _fold_bn(ks[23], ks[0], ks[5], ks[9], expansion * planes)
    return p


# ----------------------------- pure-JAX reference ------------------------------

def reference_forward(x, params, heads):
    bsz, c_in, height, width = x.shape
    planes = params["w1"].shape[1]
    d = planes // heads
    seq = height * width
    c_out = params["w3"].shape[1]

    xf = jnp.transpose(x.reshape(bsz, c_in, seq), (0, 2, 1))       # (B, L, Cin)
    out1 = jnp.maximum(xf @ params["w1"] * params["bn1_s"] + params["bn1_b"], 0.0)

    wqkv, bqkv = params["wqkv_h"], params["bqkv_h"]
    heads_attn = []
    for h in range(heads):
        q = out1 @ wqkv[h] + bqkv[h]                               # scale folded
        k = out1 @ wqkv[heads + h] + bqkv[heads + h]
        v = out1 @ wqkv[2 * heads + h] + bqkv[2 * heads + h]
        cc = jnp.einsum("bid,bjd->bij", q, k)
        cp = jnp.einsum("bid,dj->bij", q, params["pos"])
        beta = jax.nn.softmax(cc + cp, axis=-1)
        heads_attn.append(jnp.einsum("bij,bjd->bid", beta, v))     # (B, L, d)
    attn = jnp.stack(heads_attn, axis=1)                           # (B, h, L, d)
    af = jnp.transpose(attn.reshape(bsz, planes, seq), (0, 2, 1))  # view() quirk

    out2 = jnp.maximum(af * params["bn2_s"] + params["bn2_b"], 0.0)
    out3 = out2 @ params["w3"] * params["bn3_s"] + params["bn3_b"]
    idn = xf @ params["wd"] * params["bnd_s"] + params["bnd_b"]
    y = jnp.maximum(out3 + idn, 0.0)
    return jnp.transpose(y, (0, 2, 1)).reshape(bsz, c_out, height, width)


# ----------------------------- main --------------------------------------------

if __name__ == "__main__":
    key = jax.random.PRNGKey(0)
    k_x, k_p = jax.random.split(key)

    batch, in_planes, planes, heads = 2, 16, 16, 4
    height = width = 8  # resolution=(8, 8)

    x = jax.random.normal(k_x, (batch, in_planes, height, width), jnp.float32)
    params = init_params(k_p, in_planes, planes, heads, height, width)

    fwd = jax.jit(functools.partial(bottleneck_forward, heads=heads))
    y = jax.block_until_ready(fwd(x, params))

    assert y.shape == (batch, 4 * planes, height, width), y.shape
    assert bool(jnp.all(jnp.isfinite(y)))
    assert bool(jnp.all(y >= 0.0))  # final ReLU

    # Numerical check against a pure-JAX reference using the same parameters.
    y_ref = reference_forward(x, params, heads)
    assert bool(jnp.allclose(y, y_ref, atol=5e-2, rtol=5e-2)), \
        float(jnp.max(jnp.abs(y - y_ref)))

    print("KERNEL_OK")
</pallas_src>

<mosaic_0001>
module attributes {stable_mosaic.version = 11 : i64} {
  func.func @mhsa_stage_kernel(%arg0: i32, %arg1: memref<1x64x16xf32, #tpu.memory_space<vmem>>, %arg2: memref<16x16xf32, #tpu.memory_space<vmem>>, %arg3: memref<1x16xf32, #tpu.memory_space<vmem>>, %arg4: memref<1x16xf32, #tpu.memory_space<vmem>>, %arg5: memref<12x16x4xf32, #tpu.memory_space<vmem>>, %arg6: memref<12x1x4xf32, #tpu.memory_space<vmem>>, %arg7: memref<4x64xf32, #tpu.memory_space<vmem>>, %arg8: memref<1x256x4xf32, #tpu.memory_space<vmem>>) attributes {dimension_semantics = [#tpu.dimension_semantics<parallel>], iteration_bounds = array<i64: 2>, scalar_prefetch = 0 : i64, scratch_operands = 0 : i64, tpu.core_type = #tpu.core_type<tc>, window_params = [{transform_indices = @transform_0, window_bounds = array<i64: 1, 64, 16>}, {pipeline_mode = #tpu.pipeline_mode<synchronous>, transform_indices = @transform_1, window_bounds = array<i64: 16, 16>}, {pipeline_mode = #tpu.pipeline_mode<synchronous>, transform_indices = @transform_2, window_bounds = array<i64: 1, 16>}, {pipeline_mode = #tpu.pipeline_mode<synchronous>, transform_indices = @transform_3, window_bounds = array<i64: 1, 16>}, {pipeline_mode = #tpu.pipeline_mode<synchronous>, transform_indices = @transform_4, window_bounds = array<i64: 12, 16, 4>}, {pipeline_mode = #tpu.pipeline_mode<synchronous>, transform_indices = @transform_5, window_bounds = array<i64: 12, 1, 4>}, {pipeline_mode = #tpu.pipeline_mode<synchronous>, transform_indices = @transform_6, window_bounds = array<i64: 4, 64>}, {transform_indices = @transform_7, window_bounds = array<i64: 1, 256, 4>}]} {
    %c0 = arith.constant 0 : index
    %c0_0 = arith.constant 0 : index
    %c0_1 = arith.constant 0 : index
    %0 = vector.load %arg1[%c0, %c0_0, %c0_1] : memref<1x64x16xf32, #tpu.memory_space<vmem>>, vector<1x64x16xf32>
    %1 = vector.shape_cast %0 : vector<1x64x16xf32> to vector<64x16xf32>
    %c0_2 = arith.constant 0 : index
    %c0_3 = arith.constant 0 : index
    %2 = vector.load %arg2[%c0_2, %c0_3] : memref<16x16xf32, #tpu.memory_space<vmem>>, vector<16x16xf32>
    %cst = arith.constant dense<0.000000e+00> : vector<64x16xf32>
    %3 = tpu.matmul %1, %2, %cst {dimension_numbers = #tpu.dot_dimension_numbers<[1], [0], [0], [1], [0, 0, 1, 1], [], []>} : vector<64x16xf32>, vector<16x16xf32>, vector<64x16xf32> -> vector<64x16xf32>
    %c0_4 = arith.constant 0 : index
    %c0_5 = arith.constant 0 : index
    %4 = vector.load %arg3[%c0_4, %c0_5] : memref<1x16xf32, #tpu.memory_space<vmem>>, vector<1x16xf32>
    %5 = vector.broadcast %4 : vector<1x16xf32> to vector<64x16xf32>
    %6 = arith.mulf %3, %5 : vector<64x16xf32>
    %c0_6 = arith.constant 0 : index
    %c0_7 = arith.constant 0 : index
    %7 = vector.load %arg4[%c0_6, %c0_7] : memref<1x16xf32, #tpu.memory_space<vmem>>, vector<1x16xf32>
    %8 = vector.broadcast %7 : vector<1x16xf32> to vector<64x16xf32>
    %9 = arith.addf %6, %8 : vector<64x16xf32>
    %cst_8 = arith.constant 0.000000e+00 : f32
    %10 = vector.broadcast %cst_8 : f32 to vector<64x16xf32>
    %11 = arith.maximumf %9, %10 : vector<64x16xf32>
    %c0_9 = arith.constant 0 : index
    %c0_10 = arith.constant 0 : index
    %12 = vector.load %arg7[%c0_9, %c0_10] : memref<4x64xf32, #tpu.memory_space<vmem>>, vector<4x64xf32>
    %c0_11 = arith.constant 0 : index
    %c0_12 = arith.constant 0 : index
    %c0_13 = arith.constant 0 : index
    %13 = vector.load %arg5[%c0_11, %c0_12, %c0_13] : memref<12x16x4xf32, #tpu.memory_space<vmem>>, vector<1x16x4xf32>
    %14 = vector.shape_cast %13 : vector<1x16x4xf32> to vector<16x4xf32>
    %cst_14 = arith.constant dense<0.000000e+00> : vector<64x4xf32>
    %15 = tpu.matmul %11, %14, %cst_14 {dimension_numbers = #tpu.dot_dimension_numbers<[1], [0], [0], [1], [0, 0, 1, 1], [], []>} : vector<64x16xf32>, vector<16x4xf32>, vector<64x4xf32> -> vector<64x4xf32>
    %c0_15 = arith.constant 0 : index
    %c0_16 = arith.constant 0 : index
    %c0_17 = arith.constant 0 : index
    %16 = vector.load %arg6[%c0_15, %c0_16, %c0_17] : memref<12x1x4xf32, #tpu.memory_space<vmem>>, vector<1x1x4xf32>
    %17 = vector.shape_cast %16 : vector<1x1x4xf32> to vector<1x4xf32>
    %18 = vector.broadcast %17 : vector<1x4xf32> to vector<64x4xf32>
    %19 = arith.addf %15, %18 : vector<64x4xf32>
    %c4 = arith.constant 4 : index
    %c0_18 = arith.constant 0 : index
    %c0_19 = arith.constant 0 : index
    %20 = vector.load %arg5[%c4, %c0_18, %c0_19] : memref<12x16x4xf32, #tpu.memory_space<vmem>>, vector<1x16x4xf32>
    %21 = vector.shape_cast %20 : vector<1x16x4xf32> to vector<16x4xf32>
    %cst_20 = arith.constant dense<0.000000e+00> : vector<64x4xf32>
    %22 = tpu.matmul %11, %21, %cst_20 {dimension_numbers = #tpu.dot_dimension_numbers<[1], [0], [0], [1], [0, 0, 1, 1], [], []>} : vector<64x16xf32>, vector<16x4xf32>, vector<64x4xf32> -> vector<64x4xf32>
    %c4_21 = arith.constant 4 : index
    %c0_22 = arith.constant 0 : index
    %c0_23 = arith.constant 0 : index
    %23 = vector.load %arg6[%c4_21, %c0_22, %c0_23] : memref<12x1x4xf32, #tpu.memory_space<vmem>>, vector<1x1x4xf32>
    %24 = vector.shape_cast %23 : vector<1x1x4xf32> to vector<1x4xf32>
    %25 = vector.broadcast %24 : vector<1x4xf32> to vector<64x4xf32>
    %26 = arith.addf %22, %25 : vector<64x4xf32>
    %c8 = arith.constant 8 : index
    %c0_24 = arith.constant 0 : index
    %c0_25 = arith.constant 0 : index
    %27 = vector.load %arg5[%c8, %c0_24, %c0_25] : memref<12x16x4xf32, #tpu.memory_space<vmem>>, vector<1x16x4xf32>
    %28 = vector.shape_cast %27 : vector<1x16x4xf32> to vector<16x4xf32>
    %cst_26 = arith.constant dense<0.000000e+00> : vector<64x4xf32>
    %29 = tpu.matmul %11, %28, %cst_26 {dimension_numbers = #tpu.dot_dimension_numbers<[1], [0], [0], [1], [0, 0, 1, 1], [], []>} : vector<64x16xf32>, vector<16x4xf32>, vector<64x4xf32> -> vector<64x4xf32>
    %c8_27 = arith.constant 8 : index
    %c0_28 = arith.constant 0 : index
    %c0_29 = arith.constant 0 : index
    %30 = vector.load %arg6[%c8_27, %c0_28, %c0_29] : memref<12x1x4xf32, #tpu.memory_space<vmem>>, vector<1x1x4xf32>
    %31 = vector.shape_cast %30 : vector<1x1x4xf32> to vector<1x4xf32>
    %32 = vector.broadcast %31 : vector<1x4xf32> to vector<64x4xf32>
    %33 = arith.addf %29, %32 : vector<64x4xf32>
    %cst_30 = arith.constant dense<0.000000e+00> : vector<64x64xf32>
    %34 = tpu.matmul %19, %26, %cst_30 {dimension_numbers = #tpu.dot_dimension_numbers<[1], [1], [0], [0], [0, 0, 1, 0], [], []>} : vector<64x4xf32>, vector<64x4xf32>, vector<64x64xf32> -> vector<64x64xf32>
    %cst_31 = arith.constant dense<0.000000e+00> : vector<64x64xf32>
    %35 = tpu.matmul %19, %12, %cst_31 {dimension_numbers = #tpu.dot_dimension_numbers<[1], [0], [0], [1], [0, 0, 1, 1], [], []>} : vector<64x4xf32>, vector<4x64xf32>, vector<64x64xf32> -> vector<64x64xf32>
    %36 = arith.addf %34, %35 : vector<64x64xf32>
    %cst_32 = arith.constant dense<0xFF800000> : vector<64xf32>
    %37 = vector.multi_reduction <maximumf>, %36, %cst_32 [1] : vector<64x64xf32> to vector<64xf32>
    %38 = vector.shape_cast %37 : vector<64xf32> to vector<64x1xf32>
    %39 = vector.broadcast %38 : vector<64x1xf32> to vector<64x64xf32>
    %40 = arith.subf %36, %39 : vector<64x64xf32>
    %41 = math.exp %40 : vector<64x64xf32>
    %cst_33 = arith.constant dense<0.000000e+00> : vector<64xf32>
    %42 = vector.multi_reduction <add>, %41, %cst_33 [1] : vector<64x64xf32> to vector<64xf32>
    %43 = vector.shape_cast %42 : vector<64xf32> to vector<64x1xf32>
    %44 = tpu.reciprocal %43 {approx = true} : vector<64x1xf32> -> vector<64x1xf32>
    %45 = vector.broadcast %44 : vector<64x1xf32> to vector<64x64xf32>
    %46 = arith.mulf %41, %45 : vector<64x64xf32>
    %cst_34 = arith.constant dense<0.000000e+00> : vector<64x4xf32>
    %47 = tpu.matmul %46, %33, %cst_34 {dimension_numbers = #tpu.dot_dimension_numbers<[1], [0], [0], [1], [0, 0, 1, 1], [], []>} : vector<64x64xf32>, vector<64x4xf32>, vector<64x4xf32> -> vector<64x4xf32>
    %c0_35 = arith.constant 0 : index
    %c0_36 = arith.constant 0 : index
    %c0_37 = arith.constant 0 : index
    %48 = vector.load %arg8[%c0_35, %c0_36, %c0_37] : memref<1x256x4xf32, #tpu.memory_space<vmem>>, vector<1x64x4xf32>
    %49 = vector.shape_cast %48 : vector<1x64x4xf32> to vector<64x4xf32>
    %50 = vector.shape_cast %47 : vector<64x4xf32> to vector<1x64x4xf32>
    tpu.vector_store %arg8[%c0_35, %c0_36, %c0_37], %50 {strides = array<i32>} : memref<1x256x4xf32, #tpu.memory_space<vmem>>, vector<1x64x4xf32>,
    %c1 = arith.constant 1 : index
    %c0_38 = arith.constant 0 : index
    %c0_39 = arith.constant 0 : index
    %51 = vector.load %arg5[%c1, %c0_38, %c0_39] : memref<12x16x4xf32, #tpu.memory_space<vmem>>, vector<1x16x4xf32>
    %52 = vector.shape_cast %51 : vector<1x16x4xf32> to vector<16x4xf32>
    %cst_40 = arith.constant dense<0.000000e+00> : vector<64x4xf32>
    %53 = tpu.matmul %11, %52, %cst_40 {dimension_numbers = #tpu.dot_dimension_numbers<[1], [0], [0], [1], [0, 0, 1, 1], [], []>} : vector<64x16xf32>, vector<16x4xf32>, vector<64x4xf32> -> vector<64x4xf32>
    %c1_41 = arith.constant 1 : index
    %c0_42 = arith.constant 0 : index
    %c0_43 = arith.constant 0 : index
    %54 = vector.load %arg6[%c1_41, %c0_42, %c0_43] : memref<12x1x4xf32, #tpu.memory_space<vmem>>, vector<1x1x4xf32>
    %55 = vector.shape_cast %54 : vector<1x1x4xf32> to vector<1x4xf32>
    %56 = vector.broadcast %55 : vector<1x4xf32> to vector<64x4xf32>
    %57 = arith.addf %53, %56 : vector<64x4xf32>
    %c5 = arith.constant 5 : index
    %c0_44 = arith.constant 0 : index
    %c0_45 = arith.constant 0 : index
    %58 = vector.load %arg5[%c5, %c0_44, %c0_45] : memref<12x16x4xf32, #tpu.memory_space<vmem>>, vector<1x16x4xf32>
    %59 = vector.shape_cast %58 : vector<1x16x4xf32> to vector<16x4xf32>
    %cst_46 = arith.constant dense<0.000000e+00> : vector<64x4xf32>
    %60 = tpu.matmul %11, %59, %cst_46 {dimension_numbers = #tpu.dot_dimension_numbers<[1], [0], [0], [1], [0, 0, 1, 1], [], []>} : vector<64x16xf32>, vector<16x4xf32>, vector<64x4xf32> -> vector<64x4xf32>
    %c5_47 = arith.constant 5 : index
    %c0_48 = arith.constant 0 : index
    %c0_49 = arith.constant 0 : index
    %61 = vector.load %arg6[%c5_47, %c0_48, %c0_49] : memref<12x1x4xf32, #tpu.memory_space<vmem>>, vector<1x1x4xf32>
    %62 = vector.shape_cast %61 : vector<1x1x4xf32> to vector<1x4xf32>
    %63 = vector.broadcast %62 : vector<1x4xf32> to vector<64x4xf32>
    %64 = arith.addf %60, %63 : vector<64x4xf32>
    %c9 = arith.constant 9 : index
    %c0_50 = arith.constant 0 : index
    %c0_51 = arith.constant 0 : index
    %65 = vector.load %arg5[%c9, %c0_50, %c0_51] : memref<12x16x4xf32, #tpu.memory_space<vmem>>, vector<1x16x4xf32>
    %66 = vector.shape_cast %65 : vector<1x16x4xf32> to vector<16x4xf32>
    %cst_52 = arith.constant dense<0.000000e+00> : vector<64x4xf32>
    %67 = tpu.matmul %11, %66, %cst_52 {dimension_numbers = #tpu.dot_dimension_numbers<[1], [0], [0], [1], [0, 0, 1, 1], [], []>} : vector<64x16xf32>, vector<16x4xf32>, vector<64x4xf32> -> vector<64x4xf32>
    %c9_53 = arith.constant 9 : index
    %c0_54 = arith.constant 0 : index
    %c0_55 = arith.constant 0 : index
    %68 = vector.load %arg6[%c9_53, %c0_54, %c0_55] : memref<12x1x4xf32, #tpu.memory_space<vmem>>, vector<1x1x4xf32>
    %69 = vector.shape_cast %68 : vector<1x1x4xf32> to vector<1x4xf32>
    %70 = vector.broadcast %69 : vector<1x4xf32> to vector<64x4xf32>
    %71 = arith.addf %67, %70 : vector<64x4xf32>
    %cst_56 = arith.constant dense<0.000000e+00> : vector<64x64xf32>
    %72 = tpu.matmul %57, %64, %cst_56 {dimension_numbers = #tpu.dot_dimension_numbers<[1], [1], [0], [0], [0, 0, 1, 0], [], []>} : vector<64x4xf32>, vector<64x4xf32>, vector<64x64xf32> -> vector<64x64xf32>
    %cst_57 = arith.constant dense<0.000000e+00> : vector<64x64xf32>
    %73 = tpu.matmul %57, %12, %cst_57 {dimension_numbers = #tpu.dot_dimension_numbers<[1], [0], [0], [1], [0, 0, 1, 1], [], []>} : vector<64x4xf32>, vector<4x64xf32>, vector<64x64xf32> -> vector<64x64xf32>
    %74 = arith.addf %72, %73 : vector<64x64xf32>
    %cst_58 = arith.constant dense<0xFF800000> : vector<64xf32>
    %75 = vector.multi_reduction <maximumf>, %74, %cst_58 [1] : vector<64x64xf32> to vector<64xf32>
    %76 = vector.shape_cast %75 : vector<64xf32> to vector<64x1xf32>
    %77 = vector.broadcast %76 : vector<64x1xf32> to vector<64x64xf32>
    %78 = arith.subf %74, %77 : vector<64x64xf32>
    %79 = math.exp %78 : vector<64x64xf32>
    %cst_59 = arith.constant dense<0.000000e+00> : vector<64xf32>
    %80 = vector.multi_reduction <add>, %79, %cst_59 [1] : vector<64x64xf32> to vector<64xf32>
    %81 = vector.shape_cast %80 : vector<64xf32> to vector<64x1xf32>
    %82 = tpu.reciprocal %81 {approx = true} : vector<64x1xf32> -> vector<64x1xf32>
    %83 = vector.broadcast %82 : vector<64x1xf32> to vector<64x64xf32>
    %84 = arith.mulf %79, %83 : vector<64x64xf32>
    %cst_60 = arith.constant dense<0.000000e+00> : vector<64x4xf32>
    %85 = tpu.matmul %84, %71, %cst_60 {dimension_numbers = #tpu.dot_dimension_numbers<[1], [0], [0], [1], [0, 0, 1, 1], [], []>} : vector<64x64xf32>, vector<64x4xf32>, vector<64x4xf32> -> vector<64x4xf32>
    %c0_61 = arith.constant 0 : index
    %c64 = arith.constant 64 : index
    %c0_62 = arith.constant 0 : index
    %86 = vector.load %arg8[%c0_61, %c64, %c0_62] : memref<1x256x4xf32, #tpu.memory_space<vmem>>, vector<1x64x4xf32>
    %87 = vector.shape_cast %86 : vector<1x64x4xf32> to vector<64x4xf32>
    %88 = vector.shape_cast %85 : vector<64x4xf32> to vector<1x64x4xf32>
    tpu.vector_store %arg8[%c0_61, %c64, %c0_62], %88 {strides = array<i32>} : memref<1x256x4xf32, #tpu.memory_space<vmem>>, vector<1x64x4xf32>,
    %c2 = arith.constant 2 : index
    %c0_63 = arith.constant 0 : index
    %c0_64 = arith.constant 0 : index
    %89 = vector.load %arg5[%c2, %c0_63, %c0_64] : memref<12x16x4xf32, #tpu.memory_space<vmem>>, vector<1x16x4xf32>
    %90 = vector.shape_cast %89 : vector<1x16x4xf32> to vector<16x4xf32>
    %cst_65 = arith.constant dense<0.000000e+00> : vector<64x4xf32>
    %91 = tpu.matmul %11, %90, %cst_65 {dimension_numbers = #tpu.dot_dimension_numbers<[1], [0], [0], [1], [0, 0, 1, 1], [], []>} : vector<64x16xf32>, vector<16x4xf32>, vector<64x4xf32> -> vector<64x4xf32>
    %c2_66 = arith.constant 2 : index
    %c0_67 = arith.constant 0 : index
    %c0_68 = arith.constant 0 : index
    %92 = vector.load %arg6[%c2_66, %c0_67, %c0_68] : memref<12x1x4xf32, #tpu.memory_space<vmem>>, vector<1x1x4xf32>
    %93 = vector.shape_cast %92 : vector<1x1x4xf32> to vector<1x4xf32>
    %94 = vector.broadcast %93 : vector<1x4xf32> to vector<64x4xf32>
    %95 = arith.addf %91, %94 : vector<64x4xf32>
    %c6 = arith.constant 6 : index
    %c0_69 = arith.constant 0 : index
    %c0_70 = arith.constant 0 : index
    %96 = vector.load %arg5[%c6, %c0_69, %c0_70] : memref<12x16x4xf32, #tpu.memory_space<vmem>>, vector<1x16x4xf32>
    %97 = vector.shape_cast %96 : vector<1x16x4xf32> to vector<16x4xf32>
    %cst_71 = arith.constant dense<0.000000e+00> : vector<64x4xf32>
    %98 = tpu.matmul %11, %97, %cst_71 {dimension_numbers = #tpu.dot_dimension_numbers<[1], [0], [0], [1], [0, 0, 1, 1], [], []>} : vector<64x16xf32>, vector<16x4xf32>, vector<64x4xf32> -> vector<64x4xf32>
    %c6_72 = arith.constant 6 : index
    %c0_73 = arith.constant 0 : index
    %c0_74 = arith.constant 0 : index
    %99 = vector.load %arg6[%c6_72, %c0_73, %c0_74] : memref<12x1x4xf32, #tpu.memory_space<vmem>>, vector<1x1x4xf32>
    %100 = vector.shape_cast %99 : vector<1x1x4xf32> to vector<1x4xf32>
    %101 = vector.broadcast %100 : vector<1x4xf32> to vector<64x4xf32>
    %102 = arith.addf %98, %101 : vector<64x4xf32>
    %c10 = arith.constant 10 : index
    %c0_75 = arith.constant 0 : index
    %c0_76 = arith.constant 0 : index
    %103 = vector.load %arg5[%c10, %c0_75, %c0_76] : memref<12x16x4xf32, #tpu.memory_space<vmem>>, vector<1x16x4xf32>
    %104 = vector.shape_cast %103 : vector<1x16x4xf32> to vector<16x4xf32>
    %cst_77 = arith.constant dense<0.000000e+00> : vector<64x4xf32>
    %105 = tpu.matmul %11, %104, %cst_77 {dimension_numbers = #tpu.dot_dimension_numbers<[1], [0], [0], [1], [0, 0, 1, 1], [], []>} : vector<64x16xf32>, vector<16x4xf32>, vector<64x4xf32> -> vector<64x4xf32>
    %c10_78 = arith.constant 10 : index
    %c0_79 = arith.constant 0 : index
    %c0_80 = arith.constant 0 : index
    %106 = vector.load %arg6[%c10_78, %c0_79, %c0_80] : memref<12x1x4xf32, #tpu.memory_space<vmem>>, vector<1x1x4xf32>
    %107 = vector.shape_cast %106 : vector<1x1x4xf32> to vector<1x4xf32>
    %108 = vector.broadcast %107 : vector<1x4xf32> to vector<64x4xf32>
    %109 = arith.addf %105, %108 : vector<64x4xf32>
    %cst_81 = arith.constant dense<0.000000e+00> : vector<64x64xf32>
    %110 = tpu.matmul %95, %102, %cst_81 {dimension_numbers = #tpu.dot_dimension_numbers<[1], [1], [0], [0], [0, 0, 1, 0], [], []>} : vector<64x4xf32>, vector<64x4xf32>, vector<64x64xf32> -> vector<64x64xf32>
    %cst_82 = arith.constant dense<0.000000e+00> : vector<64x64xf32>
    %111 = tpu.matmul %95, %12, %cst_82 {dimension_numbers = #tpu.dot_dimension_numbers<[1], [0], [0], [1], [0, 0, 1, 1], [], []>} : vector<64x4xf32>, vector<4x64xf32>, vector<64x64xf32> -> vector<64x64xf32>
    %112 = arith.addf %110, %111 : vector<64x64xf32>
    %cst_83 = arith.constant dense<0xFF800000> : vector<64xf32>
    %113 = vector.multi_reduction <maximumf>, %112, %cst_83 [1] : vector<64x64xf32> to vector<64xf32>
    %114 = vector.shape_cast %113 : vector<64xf32> to vector<64x1xf32>
    %115 = vector.broadcast %114 : vector<64x1xf32> to vector<64x64xf32>
    %116 = arith.subf %112, %115 : vector<64x64xf32>
    %117 = math.exp %116 : vector<64x64xf32>
    %cst_84 = arith.constant dense<0.000000e+00> : vector<64xf32>
    %118 = vector.multi_reduction <add>, %117, %cst_84 [1] : vector<64x64xf32> to vector<64xf32>
    %119 = vector.shape_cast %118 : vector<64xf32> to vector<64x1xf32>
    %120 = tpu.reciprocal %119 {approx = true} : vector<64x1xf32> -> vector<64x1xf32>
    %121 = vector.broadcast %120 : vector<64x1xf32> to vector<64x64xf32>
    %122 = arith.mulf %117, %121 : vector<64x64xf32>
    %cst_85 = arith.constant dense<0.000000e+00> : vector<64x4xf32>
    %123 = tpu.matmul %122, %109, %cst_85 {dimension_numbers = #tpu.dot_dimension_numbers<[1], [0], [0], [1], [0, 0, 1, 1], [], []>} : vector<64x64xf32>, vector<64x4xf32>, vector<64x4xf32> -> vector<64x4xf32>
    %c0_86 = arith.constant 0 : index
    %c128 = arith.constant 128 : index
    %c0_87 = arith.constant 0 : index
    %124 = vector.load %arg8[%c0_86, %c128, %c0_87] : memref<1x256x4xf32, #tpu.memory_space<vmem>>, vector<1x64x4xf32>
    %125 = vector.shape_cast %124 : vector<1x64x4xf32> to vector<64x4xf32>
    %126 = vector.shape_cast %123 : vector<64x4xf32> to vector<1x64x4xf32>
    tpu.vector_store %arg8[%c0_86, %c128, %c0_87], %126 {strides = array<i32>} : memref<1x256x4xf32, #tpu.memory_space<vmem>>, vector<1x64x4xf32>,
    %c3 = arith.constant 3 : index
    %c0_88 = arith.constant 0 : index
    %c0_89 = arith.constant 0 : index
    %127 = vector.load %arg5[%c3, %c0_88, %c0_89] : memref<12x16x4xf32, #tpu.memory_space<vmem>>, vector<1x16x4xf32>
    %128 = vector.shape_cast %127 : vector<1x16x4xf32> to vector<16x4xf32>
    %cst_90 = arith.constant dense<0.000000e+00> : vector<64x4xf32>
    %129 = tpu.matmul %11, %128, %cst_90 {dimension_numbers = #tpu.dot_dimension_numbers<[1], [0], [0], [1], [0, 0, 1, 1], [], []>} : vector<64x16xf32>, vector<16x4xf32>, vector<64x4xf32> -> vector<64x4xf32>
    %c3_91 = arith.constant 3 : index
    %c0_92 = arith.constant 0 : index
    %c0_93 = arith.constant 0 : index
    %130 = vector.load %arg6[%c3_91, %c0_92, %c0_93] : memref<12x1x4xf32, #tpu.memory_space<vmem>>, vector<1x1x4xf32>
    %131 = vector.shape_cast %130 : vector<1x1x4xf32> to vector<1x4xf32>
    %132 = vector.broadcast %131 : vector<1x4xf32> to vector<64x4xf32>
    %133 = arith.addf %129, %132 : vector<64x4xf32>
    %c7 = arith.constant 7 : index
    %c0_94 = arith.constant 0 : index
    %c0_95 = arith.constant 0 : index
    %134 = vector.load %arg5[%c7, %c0_94, %c0_95] : memref<12x16x4xf32, #tpu.memory_space<vmem>>, vector<1x16x4xf32>
    %135 = vector.shape_cast %134 : vector<1x16x4xf32> to vector<16x4xf32>
    %cst_96 = arith.constant dense<0.000000e+00> : vector<64x4xf32>
    %136 = tpu.matmul %11, %135, %cst_96 {dimension_numbers = #tpu.dot_dimension_numbers<[1], [0], [0], [1], [0, 0, 1, 1], [], []>} : vector<64x16xf32>, vector<16x4xf32>, vector<64x4xf32> -> vector<64x4xf32>
    %c7_97 = arith.constant 7 : index
    %c0_98 = arith.constant 0 : index
    %c0_99 = arith.constant 0 : index
    %137 = vector.load %arg6[%c7_97, %c0_98, %c0_99] : memref<12x1x4xf32, #tpu.memory_space<vmem>>, vector<1x1x4xf32>
    %138 = vector.shape_cast %137 : vector<1x1x4xf32> to vector<1x4xf32>
    %139 = vector.broadcast %138 : vector<1x4xf32> to vector<64x4xf32>
    %140 = arith.addf %136, %139 : vector<64x4xf32>
    %c11 = arith.constant 11 : index
    %c0_100 = arith.constant 0 : index
    %c0_101 = arith.constant 0 : index
    %141 = vector.load %arg5[%c11, %c0_100, %c0_101] : memref<12x16x4xf32, #tpu.memory_space<vmem>>, vector<1x16x4xf32>
    %142 = vector.shape_cast %141 : vector<1x16x4xf32> to vector<16x4xf32>
    %cst_102 = arith.constant dense<0.000000e+00> : vector<64x4xf32>
    %143 = tpu.matmul %11, %142, %cst_102 {dimension_numbers = #tpu.dot_dimension_numbers<[1], [0], [0], [1], [0, 0, 1, 1], [], []>} : vector<64x16xf32>, vector<16x4xf32>, vector<64x4xf32> -> vector<64x4xf32>
    %c11_103 = arith.constant 11 : index
    %c0_104 = arith.constant 0 : index
    %c0_105 = arith.constant 0 : index
    %144 = vector.load %arg6[%c11_103, %c0_104, %c0_105] : memref<12x1x4xf32, #tpu.memory_space<vmem>>, vector<1x1x4xf32>
    %145 = vector.shape_cast %144 : vector<1x1x4xf32> to vector<1x4xf32>
    %146 = vector.broadcast %145 : vector<1x4xf32> to vector<64x4xf32>
    %147 = arith.addf %143, %146 : vector<64x4xf32>
    %cst_106 = arith.constant dense<0.000000e+00> : vector<64x64xf32>
    %148 = tpu.matmul %133, %140, %cst_106 {dimension_numbers = #tpu.dot_dimension_numbers<[1], [1], [0], [0], [0, 0, 1, 0], [], []>} : vector<64x4xf32>, vector<64x4xf32>, vector<64x64xf32> -> vector<64x64xf32>
    %cst_107 = arith.constant dense<0.000000e+00> : vector<64x64xf32>
    %149 = tpu.matmul %133, %12, %cst_107 {dimension_numbers = #tpu.dot_dimension_numbers<[1], [0], [0], [1], [0, 0, 1, 1], [], []>} : vector<64x4xf32>, vector<4x64xf32>, vector<64x64xf32> -> vector<64x64xf32>
    %150 = arith.addf %148, %149 : vector<64x64xf32>
    %cst_108 = arith.constant dense<0xFF800000> : vector<64xf32>
    %151 = vector.multi_reduction <maximumf>, %150, %cst_108 [1] : vector<64x64xf32> to vector<64xf32>
    %152 = vector.shape_cast %151 : vector<64xf32> to vector<64x1xf32>
    %153 = vector.broadcast %152 : vector<64x1xf32> to vector<64x64xf32>
    %154 = arith.subf %150, %153 : vector<64x64xf32>
    %155 = math.exp %154 : vector<64x64xf32>
    %cst_109 = arith.constant dense<0.000000e+00> : vector<64xf32>
    %156 = vector.multi_reduction <add>, %155, %cst_109 [1] : vector<64x64xf32> to vector<64xf32>
    %157 = vector.shape_cast %156 : vector<64xf32> to vector<64x1xf32>
    %158 = tpu.reciprocal %157 {approx = true} : vector<64x1xf32> -> vector<64x1xf32>
    %159 = vector.broadcast %158 : vector<64x1xf32> to vector<64x64xf32>
    %160 = arith.mulf %155, %159 : vector<64x64xf32>
    %cst_110 = arith.constant dense<0.000000e+00> : vector<64x4xf32>
    %161 = tpu.matmul %160, %147, %cst_110 {dimension_numbers = #tpu.dot_dimension_numbers<[1], [0], [0], [1], [0, 0, 1, 1], [], []>} : vector<64x64xf32>, vector<64x4xf32>, vector<64x4xf32> -> vector<64x4xf32>
    %c0_111 = arith.constant 0 : index
    %c192 = arith.constant 192 : index
    %c0_112 = arith.constant 0 : index
    %162 = vector.load %arg8[%c0_111, %c192, %c0_112] : memref<1x256x4xf32, #tpu.memory_space<vmem>>, vector<1x64x4xf32>
    %163 = vector.shape_cast %162 : vector<1x64x4xf32> to vector<64x4xf32>
    %164 = vector.shape_cast %161 : vector<64x4xf32> to vector<1x64x4xf32>
    tpu.vector_store %arg8[%c0_111, %c192, %c0_112], %164 {strides = array<i32>} : memref<1x256x4xf32, #tpu.memory_space<vmem>>, vector<1x64x4xf32>,
    return
  }
  func.func @transform_0(%arg0: i32) -> (i32, i32, i32) {
    %c0_i32 = arith.constant 0 : i32
    %c0_i32_0 = arith.constant 0 : i32
    %c0_i32_1 = arith.constant 0 : i32
    return %arg0, %c0_i32, %c0_i32_0 : i32, i32, i32
  }
  func.func @transform_1(%arg0: i32) -> (i32, i32) {
    %c0_i32 = arith.constant 0 : i32
    %c0_i32_0 = arith.constant 0 : i32
    %c0_i32_1 = arith.constant 0 : i32
    return %c0_i32, %c0_i32_0 : i32, i32
  }
  func.func @transform_2(%arg0: i32) -> (i32, i32) {
    %c0_i32 = arith.constant 0 : i32
    %c0_i32_0 = arith.constant 0 : i32
    %c0_i32_1 = arith.constant 0 : i32
    return %c0_i32, %c0_i32_0 : i32, i32
  }
  func.func @transform_3(%arg0: i32) -> (i32, i32) {
    %c0_i32 = arith.constant 0 : i32
    %c0_i32_0 = arith.constant 0 : i32
    %c0_i32_1 = arith.constant 0 : i32
    return %c0_i32, %c0_i32_0 : i32, i32
  }
  func.func @transform_4(%arg0: i32) -> (i32, i32, i32) {
    %c0_i32 = arith.constant 0 : i32
    %c0_i32_0 = arith.constant 0 : i32
    %c0_i32_1 = arith.constant 0 : i32
    %c0_i32_2 = arith.constant 0 : i32
    return %c0_i32, %c0_i32_0, %c0_i32_1 : i32, i32, i32
  }
  func.func @transform_5(%arg0: i32) -> (i32, i32, i32) {
    %c0_i32 = arith.constant 0 : i32
    %c0_i32_0 = arith.constant 0 : i32
    %c0_i32_1 = arith.constant 0 : i32
    %c0_i32_2 = arith.constant 0 : i32
    return %c0_i32, %c0_i32_0, %c0_i32_1 : i32, i32, i32
  }
  func.func @transform_6(%arg0: i32) -> (i32, i32) {
    %c0_i32 = arith.constant 0 : i32
    %c0_i32_0 = arith.constant 0 : i32
    %c0_i32_1 = arith.constant 0 : i32
    return %c0_i32, %c0_i32_0 : i32, i32
  }
  func.func @transform_7(%arg0: i32) -> (i32, i32, i32) {
    %c0_i32 = arith.constant 0 : i32
    %c0_i32_0 = arith.constant 0 : i32
    %c0_i32_1 = arith.constant 0 : i32
    return %arg0, %c0_i32, %c0_i32_0 : i32, i32, i32
  }
}

module attributes {stable_mosaic.version = 11 : i64} {
  func.func @output_stage_kernel(%arg0: i32, %arg1: memref<1x64x16xf32, #tpu.memory_space<vmem>>, %arg2: memref<1x64x16xf32, #tpu.memory_space<vmem>>, %arg3: memref<1x16xf32, #tpu.memory_space<vmem>>, %arg4: memref<1x16xf32, #tpu.memory_space<vmem>>, %arg5: memref<16x64xf32, #tpu.memory_space<vmem>>, %arg6: memref<1x64xf32, #tpu.memory_space<vmem>>, %arg7: memref<1x64xf32, #tpu.memory_space<vmem>>, %arg8: memref<16x64xf32, #tpu.memory_space<vmem>>, %arg9: memref<1x64xf32, #tpu.memory_space<vmem>>, %arg10: memref<1x64xf32, #tpu.memory_space<vmem>>, %arg11: memref<1x64x64xf32, #tpu.memory_space<vmem>>) attributes {dimension_semantics = [#tpu.dimension_semantics<parallel>], iteration_bounds = array<i64: 2>, scalar_prefetch = 0 : i64, scratch_operands = 0 : i64, tpu.core_type = #tpu.core_type<tc>, window_params = [{transform_indices = @transform_0, window_bounds = array<i64: 1, 64, 16>}, {transform_indices = @transform_1, window_bounds = array<i64: 1, 64, 16>}, {pipeline_mode = #tpu.pipeline_mode<synchronous>, transform_indices = @transform_2, window_bounds = array<i64: 1, 16>}, {pipeline_mode = #tpu.pipeline_mode<synchronous>, transform_indices = @transform_3, window_bounds = array<i64: 1, 16>}, {pipeline_mode = #tpu.pipeline_mode<synchronous>, transform_indices = @transform_4, window_bounds = array<i64: 16, 64>}, {pipeline_mode = #tpu.pipeline_mode<synchronous>, transform_indices = @transform_5, window_bounds = array<i64: 1, 64>}, {pipeline_mode = #tpu.pipeline_mode<synchronous>, transform_indices = @transform_6, window_bounds = array<i64: 1, 64>}, {pipeline_mode = #tpu.pipeline_mode<synchronous>, transform_indices = @transform_7, window_bounds = array<i64: 16, 64>}, {pipeline_mode = #tpu.pipeline_mode<synchronous>, transform_indices = @transform_8, window_bounds = array<i64: 1, 64>}, {pipeline_mode = #tpu.pipeline_mode<synchronous>, transform_indices = @transform_9, window_bounds = array<i64: 1, 64>}, {transform_indices = @transform_10, window_bounds = array<i64: 1, 64, 64>}]} {
    %c0 = arith.constant 0 : index
    %c0_0 = arith.constant 0 : index
    %c0_1 = arith.constant 0 : index
    %0 = vector.load %arg1[%c0, %c0_0, %c0_1] : memref<1x64x16xf32, #tpu.memory_space<vmem>>, vector<1x64x16xf32>
    %1 = vector.shape_cast %0 : vector<1x64x16xf32> to vector<64x16xf32>
    %c0_2 = arith.constant 0 : index
    %c0_3 = arith.constant 0 : index
    %2 = vector.load %arg3[%c0_2, %c0_3] : memref<1x16xf32, #tpu.memory_space<vmem>>, vector<1x16xf32>
    %3 = vector.broadcast %2 : vector<1x16xf32> to vector<64x16xf32>
    %4 = arith.mulf %1, %3 : vector<64x16xf32>
    %c0_4 = arith.constant 0 : index
    %c0_5 = arith.constant 0 : index
    %5 = vector.load %arg4[%c0_4, %c0_5] : memref<1x16xf32, #tpu.memory_space<vmem>>, vector<1x16xf32>
    %6 = vector.broadcast %5 : vector<1x16xf32> to vector<64x16xf32>
    %7 = arith.addf %4, %6 : vector<64x16xf32>
    %cst = arith.constant 0.000000e+00 : f32
    %8 = vector.broadcast %cst : f32 to vector<64x16xf32>
    %9 = arith.maximumf %7, %8 : vector<64x16xf32>
    %c0_6 = arith.constant 0 : index
    %c0_7 = arith.constant 0 : index
    %10 = vector.load %arg5[%c0_6, %c0_7] : memref<16x64xf32, #tpu.memory_space<vmem>>, vector<16x64xf32>
    %cst_8 = arith.constant dense<0.000000e+00> : vector<64x64xf32>
    %11 = tpu.matmul %9, %10, %cst_8 {dimension_numbers = #tpu.dot_dimension_numbers<[1], [0], [0], [1], [0, 0, 1, 1], [], []>} : vector<64x16xf32>, vector<16x64xf32>, vector<64x64xf32> -> vector<64x64xf32>
    %c0_9 = arith.constant 0 : index
    %c0_10 = arith.constant 0 : index
    %12 = vector.load %arg6[%c0_9, %c0_10] : memref<1x64xf32, #tpu.memory_space<vmem>>, vector<1x64xf32>
    %13 = vector.broadcast %12 : vector<1x64xf32> to vector<64x64xf32>
    %14 = arith.mulf %11, %13 : vector<64x64xf32>
    %c0_11 = arith.constant 0 : index
    %c0_12 = arith.constant 0 : index
    %15 = vector.load %arg7[%c0_11, %c0_12] : memref<1x64xf32, #tpu.memory_space<vmem>>, vector<1x64xf32>
    %16 = vector.broadcast %15 : vector<1x64xf32> to vector<64x64xf32>
    %17 = arith.addf %14, %16 : vector<64x64xf32>
    %c0_13 = arith.constant 0 : index
    %c0_14 = arith.constant 0 : index
    %c0_15 = arith.constant 0 : index
    %18 = vector.load %arg2[%c0_13, %c0_14, %c0_15] : memref<1x64x16xf32, #tpu.memory_space<vmem>>, vector<1x64x16xf32>
    %19 = vector.shape_cast %18 : vector<1x64x16xf32> to vector<64x16xf32>
    %c0_16 = arith.constant 0 : index
    %c0_17 = arith.constant 0 : index
    %20 = vector.load %arg8[%c0_16, %c0_17] : memref<16x64xf32, #tpu.memory_space<vmem>>, vector<16x64xf32>
    %cst_18 = arith.constant dense<0.000000e+00> : vector<64x64xf32>
    %21 = tpu.matmul %19, %20, %cst_18 {dimension_numbers = #tpu.dot_dimension_numbers<[1], [0], [0], [1], [0, 0, 1, 1], [], []>} : vector<64x16xf32>, vector<16x64xf32>, vector<64x64xf32> -> vector<64x64xf32>
    %c0_19 = arith.constant 0 : index
    %c0_20 = arith.constant 0 : index
    %22 = vector.load %arg9[%c0_19, %c0_20] : memref<1x64xf32, #tpu.memory_space<vmem>>, vector<1x64xf32>
    %23 = vector.broadcast %22 : vector<1x64xf32> to vector<64x64xf32>
    %24 = arith.mulf %21, %23 : vector<64x64xf32>
    %c0_21 = arith.constant 0 : index
    %c0_22 = arith.constant 0 : index
    %25 = vector.load %arg10[%c0_21, %c0_22] : memref<1x64xf32, #tpu.memory_space<vmem>>, vector<1x64xf32>
    %26 = vector.broadcast %25 : vector<1x64xf32> to vector<64x64xf32>
    %27 = arith.addf %24, %26 : vector<64x64xf32>
    %28 = arith.addf %17, %27 : vector<64x64xf32>
    %cst_23 = arith.constant 0.000000e+00 : f32
    %29 = vector.broadcast %cst_23 : f32 to vector<64x64xf32>
    %30 = arith.maximumf %28, %29 : vector<64x64xf32>
    %c0_24 = arith.constant 0 : index
    %c0_25 = arith.constant 0 : index
    %c0_26 = arith.constant 0 : index
    %31 = vector.load %arg11[%c0_24, %c0_25, %c0_26] : memref<1x64x64xf32, #tpu.memory_space<vmem>>, vector<1x64x64xf32>
    %32 = vector.shape_cast %31 : vector<1x64x64xf32> to vector<64x64xf32>
    %33 = vector.shape_cast %30 : vector<64x64xf32> to vector<1x64x64xf32>
    tpu.vector_store %arg11[%c0_24, %c0_25, %c0_26], %33 {strides = array<i32>} : memref<1x64x64xf32, #tpu.memory_space<vmem>>, vector<1x64x64xf32>,
    return
  }
  func.func @transform_0(%arg0: i32) -> (i32, i32, i32) {
    %c0_i32 = arith.constant 0 : i32
    %c0_i32_0 = arith.constant 0 : i32
    %c0_i32_1 = arith.constant 0 : i32
    return %arg0, %c0_i32, %c0_i32_0 : i32, i32, i32
  }
  func.func @transform_1(%arg0: i32) -> (i32, i32, i32) {
    %c0_i32 = arith.constant 0 : i32
    %c0_i32_0 = arith.constant 0 : i32
    %c0_i32_1 = arith.constant 0 : i32
    return %arg0, %c0_i32, %c0_i32_0 : i32, i32, i32
  }
  func.func @transform_2(%arg0: i32) -> (i32, i32) {
    %c0_i32 = arith.constant 0 : i32
    %c0_i32_0 = arith.constant 0 : i32
    %c0_i32_1 = arith.constant 0 : i32
    return %c0_i32, %c0_i32_0 : i32, i32
  }
  func.func @transform_3(%arg0: i32) -> (i32, i32) {
    %c0_i32 = arith.constant 0 : i32
    %c0_i32_0 = arith.constant 0 : i32
    %c0_i32_1 = arith.constant 0 : i32
    return %c0_i32, %c0_i32_0 : i32, i32
  }
  func.func @transform_4(%arg0: i32) -> (i32, i32) {
    %c0_i32 = arith.constant 0 : i32
    %c0_i32_0 = arith.constant 0 : i32
    %c0_i32_1 = arith.constant 0 : i32
    return %c0_i32, %c0_i32_0 : i32, i32
  }
  func.func @transform_5(%arg0: i32) -> (i32, i32) {
    %c0_i32 = arith.constant 0 : i32
    %c0_i32_0 = arith.constant 0 : i32
    %c0_i32_1 = arith.constant 0 : i32
    return %c0_i32, %c0_i32_0 : i32, i32
  }
  func.func @transform_6(%arg0: i32) -> (i32, i32) {
    %c0_i32 = arith.constant 0 : i32
    %c0_i32_0 = arith.constant 0 : i32
    %c0_i32_1 = arith.constant 0 : i32
    return %c0_i32, %c0_i32_0 : i32, i32
  }
  func.func @transform_7(%arg0: i32) -> (i32, i32) {
    %c0_i32 = arith.constant 0 : i32
    %c0_i32_0 = arith.constant 0 : i32
    %c0_i32_1 = arith.constant 0 : i32
    return %c0_i32, %c0_i32_0 : i32, i32
  }
  func.func @transform_8(%arg0: i32) -> (i32, i32) {
    %c0_i32 = arith.constant 0 : i32
    %c0_i32_0 = arith.constant 0 : i32
    %c0_i32_1 = arith.constant 0 : i32
    return %c0_i32, %c0_i32_0 : i32, i32
  }
  func.func @transform_9(%arg0: i32) -> (i32, i32) {
    %c0_i32 = arith.constant 0 : i32
    %c0_i32_0 = arith.constant 0 : i32
    %c0_i32_1 = arith.constant 0 : i32
    return %c0_i32, %c0_i32_0 : i32, i32
  }
  func.func @transform_10(%arg0: i32) -> (i32, i32, i32) {
    %c0_i32 = arith.constant 0 : i32
    %c0_i32_0 = arith.constant 0 : i32
    %c0_i32_1 = arith.constant 0 : i32
    return %arg0, %c0_i32, %c0_i32_0 : i32, i32, i32
  }
}

</mosaic_0001>

<bundles_post_ra>
// kernel: bottleneck_forward.3
= control target key start
LH: loop header
LB: loop body
LE: loop exit
PB: predicated region body
PF: predicated region fallthrough
CT: control target
= control target key end

     0   :  { %s1315_s0 = inlined_call_operand.vmem [shape: f32[2,64,16], index: 0, kind: input, shape index: {}]   ;;  %s1316_s1 = inlined_call_operand.vmem [shape: f32[2,64,16], index: 1, kind: input, shape index: {}]   ;;  %s1317_s2 = inlined_call_operand.vmem [shape: f32[1,16], index: 2, kind: input, shape index: {}]   ;;  %s1318_s3 = inlined_call_operand.vmem [shape: f32[1,16], index: 3, kind: input, shape index: {}]   ;;  %s1319_s4 = inlined_call_operand.vmem [shape: f32[16,64], index: 4, kind: input, shape index: {}]   ;;  %s1320_s5 = inlined_call_operand.vmem [shape: f32[1,64], index: 5, kind: input, shape index: {}]   ;;  %s1321_s6 = inlined_call_operand.vmem [shape: f32[1,64], index: 6, kind: input, shape index: {}]   ;;  %s1322_s7 = inlined_call_operand.vmem [shape: f32[16,64], index: 7, kind: input, shape index: {}]   ;;  %s1323_s8 = inlined_call_operand.vmem [shape: f32[1,64], index: 8, kind: input, shape index: {}]   ;;  %s1324_s9 = inlined_call_operand.vmem [shape: f32[1,64], index: 9, kind: input, shape index: {}]   ;;  %s1325_s10 = inlined_call_operand.hbm [shape: f32[2,64,64], index: 10, kind: output, shape index: {}]  }
   0x1   :  { %1326 = sst [smem:[#allocation5_spill]] %s1319_s4 }
   0x2   :  { %15 = vsyncpa [#allocation3], 0 }
   0x3   :  { %17 = vsyncpa [#allocation3 + $0x1], 0  ;;  %s1130_s13 = smov 0   ;;  %s1132_s14 = smov 0  }
   0x4   :  { %s1134_s15 = smov 0   ;;  %s1136_s16 = smov 0  }
   0x5 LB: > { %s1151_s17 = sadd.s32 4294967295, %s1070_s16   ;;  %s868_s18 = sadd.s32 4294967294, %s1070_s16   ;;  %s1070_s16 = sphi %s1136_s16, %s1333_s16   ;;  %s1066_s15 = sphi %s1134_s15, %s1332_s15   ;;  %s1062_s14 = sphi %s1132_s14, %s1331_s14   ;;  %s1058_s13 = sphi %s1130_s13, %s1330_s13  }
   0x6   : > { %s1155_s19 = sadd.s32 1, %s1070_s16   ;;  %s250_s20 = sadd.s32 1, %s1066_s15 }
   0x7   : > { %s247_s21 = ssub.s32 %s1070_s16, %s1155_s19  ;;  %p260_p0 = scmp.ne.s32.totalorder %s1066_s15, %s1062_s14 }
   0x8   : > { %p248_p1 = scmp.eq.s32.totalorder %s247_s21, 0  ;;  %p261_p2 = scmp.eq.s32.totalorder %s1151_s17, 1 }
   0x9   : > { %p266_p3 = scmp.ne.s32.totalorder %s1062_s14, %s1058_s13  ;;  %p267_p4 = scmp.eq.s32.totalorder %s868_s18, 1 }
   0xa   : > { %s1166_s22 = scalar_select %p248_p1, %s1066_s15, %s250_s20  }
   0xb   : > { %p1168_p5 = por %p261_p2, %p260_p0  ;;  %p1172_p6 = por %p267_p4, %p266_p3 }
   0xc   : > { %p871_p7 = scmp.ge.s32.totalorder %s1070_s16, 1  ;;  %p325_p8 = scmp.lt.s32.totalorder %s1070_s16, 3 }
   0xe   : > { %p326_p9 = pnand %p871_p7, %p325_p8 }
   0xf   : > { %v594_v0 = vld [vmem:[%s1322_s7] sm:$0xff] (!%p326_p9)  ;;  %v595_v1 = vld [vmem:[%s1322_s7 + $0x8] sm:$0xff] (!%p326_p9)  ;;  %s1329_s4 = sld [smem:[#allocation5_spill]] (!%p326_p9)  ;;  %p368_p10 = scmp.lt.s32.totalorder (!%p326_p9), %s1151_s17, 1  ;;  %vm426_vm0 = vcmask (!%p326_p9), 130048   ;;  %vm771_vm1 = vcmask (!%p326_p9), 523264  }
  0x10   : > { %329 = sbr.rel (%p326_p9) target bundleno = 284 (0x11c), region = 60  ;;  %v963_v3 = vpack.c.bf16 (!%p326_p9), %v595_v1, %v594_v0  ;;  %v877_v6 = vld [vmem:[%s1317_s2] ss:$0 sm:$0xff] (!%p326_p9)  ;;  %s365_s27 = sand.u32 (!%p326_p9), 1, %s1062_s14  }
  0x11   : > { %v878_v7 = vld [vmem:[%s1318_s3] ss:$0 sm:$0xff] (!%p326_p9)  ;;  %s872_s30 = sshll.u32 (!%p326_p9), %s365_s27, 6  ;;  %s906_s12 = sshll.u32 (!%p326_p9), %s1151_s17, 10 }
  0x12   : > { %964 = vmatprep.subr.bf16.mxu1 (!%p326_p9), %v963_v3  ;;  %v897_v49 = vld [vmem:[%s1323_s8] ss:$0 sm:$0xff] (!%p326_p9)  ;;  %s1264_s21 = scalar_lea.hbm (!%p326_p9), %s1325_s10, %s906_s12  ;;  %s1072_s26 = smov (!%p326_p9), [#allocation2]  }
  0x13   : > { %966 = vmatpush3.bf16.msra.mxu1 (!%p326_p9), %v963_v3  ;;  %v898_v52 = vld [vmem:[%s1324_s9] ss:$0 sm:$0xff] (!%p326_p9) }
  0x14   : > { %v887_v53 = vld [vmem:[%s1320_s5] ss:$0 sm:$0xff] (!%p326_p9) }
  0x15   : > { %v424_v2 = vld [vmem:[%s1329_s4] sm:$0xff] (!%p326_p9)  ;;  %v425_v4 = vld [vmem:[%s1329_s4 + $0x8] sm:$0xff] (!%p326_p9) }
  0x16   : > { %v959_v5 = vpack.c.bf16 (!%p326_p9), %v425_v4, %v424_v2  ;;  %v888_v58 = vld [vmem:[%s1321_s6] ss:$0 sm:$0xff] (!%p326_p9) }
  0x17   : > { %s369_s18 = scalar_select %p368_p10, %s1151_s17, 1 }
  0x18   : > { %960 = vmatprep.subr.bf16.mxu0 %v959_v5  ;;  %s1274_s17 = scalar_lea.sflag [#allocation3], %s365_s27 }
  0x19   : > { %s904_s20 = sshll.u32 %s369_s18, 6  ;;  %962 = vmatpush3.bf16.msra.mxu0 %v959_v5 }
  0x1a   : > { %s372_s28 = scalar_lea.vmem %s1315_s0, %s904_s20  ;;  %s1201_s11 = scalar_lea.vmem %s1316_s1, %s904_s20 }
  0x1b   : > { %v586_v8 = vld [vmem:[%s1201_s11] sm:$0xff]  ;;  %v587_v10 = vld [vmem:[%s1201_s11 + $0x8] sm:$0xff]  ;;  %v588_v13 = vld [vmem:[%s1201_s11 + $0x10] sm:$0xff] }
  0x1c   : > { %v378_v9 = vld [vmem:[%s372_s28] sm:$0xff]  ;;  %947 = vmatprep.mubr.msk.f32.mxu1 %vm426_vm0, %v586_v8  ;;  %v379_v12 = vld [vmem:[%s372_s28 + $0x8] sm:$0xff]  ;;  %v380_v14 = vld [vmem:[%s372_s28 + $0x10] sm:$0xff] }
  0x1d   : > { %v393_v11 = vmul.f32 %v877_v6, %v378_v9  ;;  %948 = vmatmul.mubr.msk.f32.vlgmr.msra.gmra.mrb[0].mxu1 %vm426_vm0, %v587_v10  ;;  %v394_v15 = vmul.f32 %v877_v6, %v379_v12  ;;  %v395_v16 = vmul.f32 %v877_v6, %v380_v14  ;;  %v381_v17 = vld [vmem:[%s372_s28 + $0x18] sm:$0xff]  ;;  %v382_v21 = vld [vmem:[%s372_s28 + $0x20] sm:$0xff]  ;;  %v383_v22 = vld [vmem:[%s372_s28 + $0x28] sm:$0xff] }
  0x1e   : > { %950 = vmatprep.mubr.msk.f32.mxu1 %vm426_vm0, %v588_v13  ;;  %v589_v19 = vld [vmem:[%s1201_s11 + $0x18] sm:$0xff]  ;;  %v396_v20 = vmul.f32 %v877_v6, %v381_v17  ;;  %v590_v25 = vld [vmem:[%s1201_s11 + $0x20] sm:$0xff]  ;;  %v397_v26 = vmul.f32 %v877_v6, %v382_v21  ;;  %v398_v27 = vmul.f32 %v877_v6, %v383_v22  ;;  %v384_v28 = vld [vmem:[%s372_s28 + $0x30] sm:$0xff] }
  0x1f   : > { %v408_v18 = vadd.f32 %v878_v7, %v393_v11  ;;  %v409_v23 = vadd.f32 %v878_v7, %v394_v15  ;;  %v410_v24 = vadd.f32 %v878_v7, %v395_v16  ;;  %v399_v31 = vmul.f32 %v877_v6, %v384_v28  ;;  %v385_v32 = vld [vmem:[%s372_s28 + $0x38] sm:$0xff]  ;;  %v591_v36 = vld [vmem:[%s1201_s11 + $0x28] sm:$0xff]  ;;  %v592_v39 = vld [vmem:[%s1201_s11 + $0x30] sm:$0xff]  ;;  %s1012_s28 = sshll.u32 %s1072_s26, 4  ;;  %s1013_s28 = int_to_ptr.vmem [resolvable:$false] %s1012_s28 }
  0x20   : > { %v411_v30 = vadd.f32 %v878_v7, %v396_v20  ;;  %v412_v35 = vadd.f32 %v878_v7, %v397_v26  ;;  %v413_v38 = vadd.f32 %v878_v7, %v398_v27  ;;  %v400_v40 = vmul.f32 %v877_v6, %v385_v32  ;;  %v593_v43 = vld [vmem:[%s1201_s11 + $0x38] sm:$0xff]  ;;  %s1245_s11 = scalar_lea.vmem [#allocation2], %s872_s30  ;;  %s1014_s29 = scalar_lea.vmem %s1013_s28, 2048 }
  0x21   : > { %v416_v29 = vmax.f32 %v408_v18, 0.0  ;;  %v417_v33 = vmax.f32 %v409_v23, 0.0  ;;  %v418_v34 = vmax.f32 %v410_v24, 0.0  ;;  %951 = vmatmul.mubr.msk.f32.gmra.mrb[2].mxu1 %vm426_vm0, %v589_v19  ;;  %v414_v42 = vadd.f32 %v878_v7, %v399_v31  ;;  %s794_s4 = sshll.u32 %s1245_s11, 4  ;;  %s1266_s4 = int_to_ptr.vmem [resolvable:$true] %s794_s4 }
  0x22   : > { %953 = vmatprep.mubr.msk.f32.mxu1 %vm426_vm0, %v590_v25  ;;  %v419_v37 = vmax.f32 %v411_v30, 0.0  ;;  %v420_v41 = vmax.f32 %v412_v35, 0.0  ;;  %v421_v44 = vmax.f32 %v413_v38, 0.0  ;;  %v415_v45 = vadd.f32 %v878_v7, %v400_v40  ;;  %s1008_s25 = scalar_lea.vmem %s1266_s4, 1024  ;;  %p1015_p0 = scmp.lt.s32.totalorder %s1266_s4, %s1013_s28 }
  0x23   : > { %931 = vmatprep.mubr.msk.f32.mxu0 %vm426_vm0, %v416_v29  ;;  %v422_v46 = vmax.f32 %v414_v42, 0.0  ;;  %p1009_p11 = scmp.ne.s32.totalorder %s1266_s4, %s1008_s25  ;;  %p1016_p1 = scmp.lt.s32.totalorder %s1014_s29, %s1008_s25 }
  0x24   : > { %932 = vmatmul.mubr.msk.f32.vlgmr.msra.gmra.mrb[0].mxu0 %vm426_vm0, %v417_v33  ;;  %v423_v47 = vmax.f32 %v415_v45, 0.0 }
  0x25   : > { %934 = vmatprep.mubr.msk.f32.mxu0 %vm426_vm0, %v418_v34  ;;  %954 = vmatmul.mubr.msk.f32.gmra.mrb[4].mxu1 %vm426_vm0, %v591_v36  ;;  %p1010_p12 = pnand %p1009_p11, %p1168_p5  ;;  %p1017_p2 = por %p1016_p1, %p1015_p0 }
  0x26   : > { %956 = vmatprep.mubr.msk.f32.mxu1 %vm426_vm0, %v592_v39 }
  0x27   : > { %p1011_p13 = pneg %p1010_p12 }
  0x28   : > { %935 = vmatmul.mubr.msk.f32.gmra.mrb[2].mxu0 %vm426_vm0, %v419_v37 }
  0x29   : > { %937 = vmatprep.mubr.msk.f32.mxu0 %vm426_vm0, %v420_v41  ;;  %957 = vmatmul.mubr.msk.f32.gmra.mrb[6].mxu1 %vm426_vm0, %v593_v43  ;;  %p1018_p3 = pnand %p1017_p2, %p1011_p13 }
  0x2c   : > { %938 = vmatmul.mubr.msk.f32.gmra.mrb[4].mxu0 %vm426_vm0, %v421_v44 }
  0x2d   : > { %940 = vmatprep.mubr.msk.f32.mxu0 %vm426_vm0, %v422_v46 }
  0x30   : > { %941 = vmatmul.mubr.msk.f32.gmra.mrb[6].mxu0 %vm426_vm0, %v423_v47 }
  0xf0   : > { %v949_v48 = vpop.f32.mrb[0].mxu1 }
  0xf1   : > { %v686_v50 = vpop.f32.mrb[1].mxu1  ;;  %v733_v51 = vmul.f32 %v949_v48, %v897_v49 }
  0xf2   : > { %v732_v54 = vmul.f32 %v897_v49, %v686_v50 }
  0xf3   : > { %v748_v59 = vadd.f32 %v898_v52, %v733_v51 }
  0xf4   : > { %v952_v55 = vpop.f32.mrb[2].mxu1  ;;  %v747_v63 = vadd.f32 %v898_v52, %v732_v54 }
  0xf5   : > { %v696_v56 = vpop.f32.mrb[3].mxu1  ;;  %v735_v62 = vmul.f32 %v952_v55, %v897_v49 }
  0xf6   : > { %v734_v1 = vmul.f32 %v897_v49, %v696_v56 }
  0xf7   : > { %v933_v57 = vpop.f32.mrb[0].mxu0  ;;  %v750_v8 = vadd.f32 %v898_v52, %v735_v62 }
  0xf8   : > { %v564_v60 = vmul.f32 %v933_v57, %v887_v53  ;;  %v517_v61 = vpop.f32.mrb[1].mxu0  ;;  %v955_v2 = vpop.f32.mrb[4].mxu1  ;;  %v749_v13 = vadd.f32 %v898_v52, %v734_v1 }
  0xf9   : > { %v563_v0 = vmul.f32 %v887_v53, %v517_v61  ;;  %v706_v4 = vpop.f32.mrb[5].mxu1  ;;  %v737_v11 = vmul.f32 %v955_v2, %v897_v49 }
  0xfa   : > { %v579_v3 = vadd.f32 %v888_v58, %v564_v60  ;;  %v736_v15 = vmul.f32 %v897_v49, %v706_v4 }
  0xfb   : > { %v578_v5 = vadd.f32 %v888_v58, %v563_v0  ;;  %v936_v6 = vpop.f32.mrb[2].mxu0  ;;  %v752_v24 = vadd.f32 %v898_v52, %v737_v11 }
  0xfc   : > { %v756_v7 = vadd.f32 %v748_v59, %v579_v3  ;;  %v566_v9 = vmul.f32 %v936_v6, %v887_v53  ;;  %v527_v10 = vpop.f32.mrb[3].mxu0  ;;  %v958_v16 = vpop.f32.mrb[6].mxu1  ;;  %v751_v29 = vadd.f32 %v898_v52, %v736_v15 }
  0xfd   : > { %v755_v12 = vadd.f32 %v747_v63, %v578_v5  ;;  %v565_v14 = vmul.f32 %v887_v53, %v527_v10  ;;  %v716_v19 = vpop.f32.mrb[7].mxu1  ;;  %v739_v27 = vmul.f32 %v958_v16, %v897_v49 }
  0xfe   : > { %v764_v17 = vmax.f32 %v756_v7, 0.0  ;;  %v581_v18 = vadd.f32 %v888_v58, %v566_v9  ;;  %v738_v31 = vmul.f32 %v897_v49, %v716_v19 }
  0xff   : > { %v763_v20 = vmax.f32 %v755_v12, 0.0  ;;  %v580_v21 = vadd.f32 %v888_v58, %v565_v14  ;;  %v939_v22 = vpop.f32.mrb[4].mxu0  ;;  %v754_v38 = vadd.f32 %v898_v52, %v739_v27 }
 0x100   : > { %773 = vst.msk [vmem:[%s1245_s11 + $0x8] sm:$0xff] %vm771_vm1, %v764_v17  ;;  %v758_v23 = vadd.f32 %v750_v8, %v581_v18  ;;  %v568_v25 = vmul.f32 %v939_v22, %v887_v53  ;;  %v537_v26 = vpop.f32.mrb[5].mxu0  ;;  %v753_v42 = vadd.f32 %v898_v52, %v738_v31 }
 0x101   : > { %772 = vst.msk [vmem:[%s1245_s11] sm:$0xff] %vm771_vm1, %v763_v20  ;;  %v757_v28 = vadd.f32 %v749_v13, %v580_v21  ;;  %v567_v30 = vmul.f32 %v887_v53, %v537_v26 }
 0x102   : > { %v766_v32 = vmax.f32 %v758_v23, 0.0  ;;  %v583_v33 = vadd.f32 %v888_v58, %v568_v25 }
 0x103   : > { %v765_v34 = vmax.f32 %v757_v28, 0.0  ;;  %v582_v35 = vadd.f32 %v888_v58, %v567_v30  ;;  %v942_v36 = vpop.f32.mrb[6].mxu0 }
 0x104   : > { %775 = vst.msk [vmem:[%s1245_s11 + $0x18] sm:$0xff] %vm771_vm1, %v766_v32  ;;  %v760_v37 = vadd.f32 %v752_v24, %v583_v33  ;;  %v570_v39 = vmul.f32 %v942_v36, %v887_v53  ;;  %v547_v40 = vpop.f32.mrb[7].mxu0 }
 0x105   : > { %774 = vst.msk [vmem:[%s1245_s11 + $0x10] sm:$0xff] %vm771_vm1, %v765_v34  ;;  %v759_v41 = vadd.f32 %v751_v29, %v582_v35  ;;  %v569_v43 = vmul.f32 %v887_v53, %v547_v40 }
 0x106   : > { %v768_v44 = vmax.f32 %v760_v37, 0.0  ;;  %v585_v45 = vadd.f32 %v888_v58, %v570_v39 }
 0x107   : > { %v767_v46 = vmax.f32 %v759_v41, 0.0  ;;  %v584_v47 = vadd.f32 %v888_v58, %v569_v43 }
 0x108   : > { %777 = vst.msk [vmem:[%s1245_s11 + $0x28] sm:$0xff] %vm771_vm1, %v768_v44  ;;  %v762_v48 = vadd.f32 %v754_v38, %v585_v45 }
 0x109   : > { %776 = vst.msk [vmem:[%s1245_s11 + $0x20] sm:$0xff] %vm771_vm1, %v767_v46  ;;  %v761_v49 = vadd.f32 %v753_v42, %v584_v47 }
 0x10a   : > { %v770_v50 = vmax.f32 %v762_v48, 0.0 }
 0x10b   : > { %v769_v51 = vmax.f32 %v761_v49, 0.0 }
 0x10c   : > { %779 = vst.msk [vmem:[%s1245_s11 + $0x38] sm:$0xff] %vm771_vm1, %v770_v50 }
 0x10d   : > { %778 = vst.msk [vmem:[%s1245_s11 + $0x30] sm:$0xff] %vm771_vm1, %v769_v51 }
 0x10e   : > { %1021 = shalt.err (!%p1018_p3)
}
 0x10f   : > { %s1022_s27 = scalar_lea.hbm %s1264_s21, 1024  ;;  %s1026_s12 = scalar_lea.hbm %s1325_s10, 2048 }
 0x110   : > { %p1023_p4 = scmp.ne.s32.totalorder %s1264_s21, %s1022_s27  ;;  %p1027_p9 = scmp.lt.u32.totalorder %s1264_s21, %s1325_s10 }
 0x111   : > { %p1028_p10 = scmp.lt.u32.totalorder %s1026_s12, %s1022_s27  ;;  %p1030_p12 = scmp.lt.u32.totalorder %s1022_s27, %s1264_s21 }
 0x112   : > { %p1024_p7 = pnand %p1023_p4, %p1168_p5 }
 0x113   : > { %p1029_p11 = por %p1028_p10, %p1027_p9 }
 0x114   : > { %p1025_p8 = pneg %p1024_p7 }
 0x115   : > { %p1031_p13 = por %p1030_p12, %p1029_p11 }
 0x117   : > { %p1032_p0 = pnand %p1031_p13, %p1025_p8 }
 0x119   : > { %1035 = shalt.err (!%p1032_p0)
}
 0x11a   : > { %s1073_s25 = smov 128   ;;  %s1074_s26 = smov 8  }
 0x11b   : > { %967 = dma.vmem_to_hbm [thread:$0]  (%p1168_p5), %s1266_s4, 1024, %s1264_s21, %s1274_s17, %s1073_s25, %s1073_s25, %s1074_s26  }
 0x11c PF: > { %p973_p1 = scmp.ge.s32.totalorder %s1070_s16, 2  ;;  %s809_s28 = sand.u32 1, %s1058_s13  }
 0x11d   : > { %s810_s29 = scalar_lea.sflag [#allocation3], %s809_s28 }
 0x11e   : > { %p970_p2 = pnand %p973_p1, %p1172_p6 }
 0x120   : > { %1053 = dma.done.wait (!%p970_p2), %s810_s29, 1024  }
 0x121   : > { %1055 = vsyncadd (!%p970_p2), %s810_s29, 4294966272  ;;  %p20_p3 = scmp.ge.s32.totalorder %s1155_s19, 4   ;;  %s1330_s13 = smov %s1062_s14 }
 0x122   : > { %s1331_s14 = smov %s1066_s15  ;;  %s1332_s15 = smov %s1166_s22 }
 0x123   : > { %s1333_s16 = smov %s1155_s19  ;;  %22 = sbr.rel (!%p20_p3) target bundleno = 5 (0x5), region = 98 }
 0x12a   :  { %815 = vsyncpa [#allocation3], 1 }
 0x12b   :  { %817 = vsyncpa [#allocation3 + $0x1], 1 }

// kernel: bottleneck_forward.2
= control target key start
LH: loop header
LB: loop body
LE: loop exit
PB: predicated region body
PF: predicated region fallthrough
CT: control target
= control target key end

     0   :  { %s5374_s24 = smov 0   ;;  %s6109_s0 = inlined_call_operand.vmem [shape: f32[2,64,16], index: 0, kind: input, shape index: {}]   ;;  %s6110_s1 = inlined_call_operand.vmem [shape: f32[16,16], index: 1, kind: input, shape index: {}]   ;;  %s6111_s2 = inlined_call_operand.vmem [shape: f32[1,16], index: 2, kind: input, shape index: {}]   ;;  %s6112_s3 = inlined_call_operand.vmem [shape: f32[1,16], index: 3, kind: input, shape index: {}]   ;;  %s6113_s4 = inlined_call_operand.vmem [shape: f32[12,16,4], index: 4, kind: input, shape index: {}]   ;;  %s6114_s5 = inlined_call_operand.vmem [shape: f32[12,1,4], index: 5, kind: input, shape index: {}]   ;;  %s6115_s6 = inlined_call_operand.vmem [shape: f32[4,64], index: 6, kind: input, shape index: {}]   ;;  %s6116_s7 = inlined_call_operand.vmem [shape: f32[2,256,4], index: 7, kind: output, shape index: {}]  }
   0x1 LB: > { %s3865_s25 = sadd.s32 4294967295, %s5332_s24   ;;  %p3869_p0 = scmp.ge.s32.totalorder %s5332_s24, 1  ;;  %s5332_s24 = sphi %s5374_s24, %s17_s24  }
   0x2   : > { %p237_p1 = scmp.lt.s32.totalorder %s5332_s24, 3 }
   0x4   : > { %p238_p2 = pnand %p3869_p0, %p237_p1 }
   0x5   : > { %v287_v0 = vld [vmem:[%s6110_s1] sm:$0xff] (!%p238_p2)  ;;  %v288_v1 = vld [vmem:[%s6110_s1 + $0x8] sm:$0xff] (!%p238_p2)  ;;  %p269_p3 = scmp.lt.s32.totalorder (!%p238_p2), %s3865_s25, 1  ;;  %vm289_vm0 = vcmask (!%p238_p2), 130048   ;;  %vm853_vm1 = vcmask (!%p238_p2), 1043456   ;;  %vm828_vm2 = vcmask (!%p238_p2), 31744  }
   0x6   : > { %241 = sbr.rel (%p238_p2) target bundleno = 3679 (0xe5f), region = 48  ;;  %v458_v2 = vld [vmem:[%s6113_s4] sm:$0xff] (!%p238_p2)  ;;  %v4943_v3 = vpack.c.bf16 (!%p238_p2), %v288_v1, %v287_v0  ;;  %v459_v4 = vld [vmem:[%s6113_s4 + $0x8] sm:$0xff] (!%p238_p2)  ;;  %vm5524_vm3 = vmpackc.low (!%p238_p2), %vm828_vm2, %vm828_vm2  ;;  %vm1091_vm4 = vcmask (!%p238_p2), 523264  }
   0x7   : > { %v4947_v5 = vpack.c.bf16 (!%p238_p2), %v459_v4, %v458_v2  ;;  %v3893_v14 = vld [vmem:[%s6113_s4 + $0x40] sm:$0xff] (!%p238_p2)  ;;  %v3894_v15 = vld [vmem:[%s6113_s4 + $0x48] sm:$0xff] (!%p238_p2) }
   0x8   : > { %4944 = vmatprep.subr.bf16.mxu0 (!%p238_p2), %v4943_v3  ;;  %v4951_v16 = vpack.c.bf16 (!%p238_p2), %v3894_v15, %v3893_v14  ;;  %v3905_v17 = vld [vmem:[%s6113_s4 + $0x80] sm:$0xff] (!%p238_p2)  ;;  %v3906_v18 = vld [vmem:[%s6113_s4 + $0x88] sm:$0xff] (!%p238_p2) }
   0x9   : > { %4946 = vmatpush3.bf16.msra.mxu0 (!%p238_p2), %v4943_v3  ;;  %5155 = vmatprep.subr.bf16.mxu1 (!%p238_p2), %v4947_v5  ;;  %v4955_v19 = vpack.c.bf16 (!%p238_p2), %v3906_v18, %v3905_v17  ;;  %v3882_v20 = vld [vmem:[%s6111_s2] ss:$0 sm:$0xff] (!%p238_p2)  ;;  %v3896_v63 = vld [vmem:[%s6114_s5 + $0x4] ss:$0 sm:$0xff] (!%p238_p2) }
   0xa   : > { %4948 = vmatprep.subr.bf16.mxu0 (!%p238_p2), %v4947_v5  ;;  %5156 = vmatpush3.bf16.msra.mxu1 (!%p238_p2), %v4947_v5  ;;  %v3883_v22 = vld [vmem:[%s6112_s3] ss:$0 sm:$0xff] (!%p238_p2) }
   0xb   : > { %4956 = vmatprep.subr.bf16.mxu1 (!%p238_p2), %v4955_v19  ;;  %v5435_v37 = vld [vmem:[%s6115_s6] sm:$0xf] (!%p238_p2) }
   0xc   : > { %v3884_v55 = vld [vmem:[%s6114_s5] ss:$0 sm:$0xff] (!%p238_p2) }
   0xd   : > { %s6120_s25 = smov (!%p269_p3, %s3865_s25), 1 }
   0xe   : > { %s4159_s11 = sshll.u32 %s6120_s25, 6  ;;  %s4160_s30 = sshll.u32 %s6120_s25, 8 }
   0xf   : > { %s273_s14 = scalar_lea.vmem %s6109_s0, %s4159_s11  ;;  %s5687_s10 = scalar_lea.vmem %s6116_s7, %s4160_s30 }
  0x10   : > { %v279_v6 = vld [vmem:[%s273_s14] sm:$0xff]  ;;  %v280_v7 = vld [vmem:[%s273_s14 + $0x8] sm:$0xff]  ;;  %v281_v8 = vld [vmem:[%s273_s14 + $0x10] sm:$0xff] }
  0x11   : > { %4459 = vmatprep.mubr.msk.f32.mxu0 %vm289_vm0, %v279_v6  ;;  %v282_v9 = vld [vmem:[%s273_s14 + $0x18] sm:$0xff]  ;;  %v283_v10 = vld [vmem:[%s273_s14 + $0x20] sm:$0xff]  ;;  %v284_v11 = vld [vmem:[%s273_s14 + $0x28] sm:$0xff] }
  0x12   : > { %4460 = vmatmul.mubr.msk.f32.vlgmr.msra.gmra.mrb[0].mxu0 %vm289_vm0, %v280_v7  ;;  %v285_v12 = vld [vmem:[%s273_s14 + $0x30] sm:$0xff]  ;;  %v286_v13 = vld [vmem:[%s273_s14 + $0x38] sm:$0xff] }
  0x13   : > { %4462 = vmatprep.mubr.msk.f32.mxu0 %vm289_vm0, %v281_v8  ;;  %4950 = vmatpush3.bf16.msra.mxu0 %v4947_v5 }
  0x14   : > { %4952 = vmatprep.subr.bf16.mxu0 %v4951_v16 }
  0x16   : > { %4463 = vmatmul.mubr.msk.f32.gmra.mrb[2].mxu0 %vm289_vm0, %v282_v9 }
  0x17   : > { %4465 = vmatprep.mubr.msk.f32.mxu0 %vm289_vm0, %v283_v10 }
  0x1a   : > { %4466 = vmatmul.mubr.msk.f32.gmra.mrb[4].mxu0 %vm289_vm0, %v284_v11 }
  0x1b   : > { %4468 = vmatprep.mubr.msk.f32.mxu0 %vm289_vm0, %v285_v12 }
  0x1e   : > { %4469 = vmatmul.mubr.msk.f32.gmra.mrb[6].mxu0 %vm289_vm0, %v286_v13 }
  0xe5   : > { %v4461_v21 = vpop.f32.mrb[0].mxu0 }
  0xe6   : > { %v427_v23 = vmul.f32 %v4461_v21, %v3882_v20  ;;  %v380_v24 = vpop.f32.mrb[1].mxu0 }
  0xe7   : > { %v426_v25 = vmul.f32 %v3882_v20, %v380_v24 }
  0xe8   : > { %v442_v26 = vadd.f32 %v3883_v22, %v427_v23 }
  0xe9   : > { %v441_v27 = vadd.f32 %v3883_v22, %v426_v25  ;;  %v4464_v28 = vpop.f32.mrb[2].mxu0 }
  0xea   : > { %v429_v29 = vmul.f32 %v4464_v28, %v3882_v20  ;;  %v390_v30 = vpop.f32.mrb[3].mxu0  ;;  %v5428_v33 = vmax.f32 %v442_v26, 0.0 }
  0xeb   : > { %v5426_v31 = vmax.f32 %v441_v27, 0.0  ;;  %v428_v32 = vmul.f32 %v3882_v20, %v390_v30 }
  0xec   : > { %v444_v34 = vadd.f32 %v3883_v22, %v429_v29 }
  0xed   : > { %v443_v35 = vadd.f32 %v3883_v22, %v428_v32  ;;  %v4467_v36 = vpop.f32.mrb[4].mxu0  ;;  %4475 = vmatprep.mubr.msk.f32.mxu0 %vm289_vm0, %v5426_v31 }
  0xee   : > { %v431_v38 = vmul.f32 %v4467_v36, %v3882_v20  ;;  %v400_v39 = vpop.f32.mrb[5].mxu0  ;;  %4476 = vmatmul.mubr.msk.f32.vlgmr.msra.gmra.mrb[8].mxu0 %vm289_vm0, %v5428_v33  ;;  %v5441_v42 = vmax.f32 %v444_v34, 0.0 }
  0xef   : > { %v5439_v40 = vmax.f32 %v443_v35, 0.0  ;;  %v430_v41 = vmul.f32 %v3882_v20, %v400_v39  ;;  %4954 = vmatpush3.bf16.msra.mxu0 %v4951_v16 }
  0xf0   : > { %v446_v43 = vadd.f32 %v3883_v22, %v431_v38  ;;  %4519 = vmatprep.subr.msk.mxu0 %vm853_vm1, %v5435_v37 }
  0xf1   : > { %v445_v44 = vadd.f32 %v3883_v22, %v430_v41  ;;  %v4470_v45 = vpop.f32.mrb[6].mxu0  ;;  %4478 = vmatprep.mubr.msk.f32.mxu0 %vm289_vm0, %v5439_v40 }
  0xf2   : > { %v5447_v46 = vmax.f32 %v446_v43, 0.0  ;;  %v433_v47 = vmul.f32 %v4470_v45, %v3882_v20  ;;  %v410_v48 = vpop.f32.mrb[7].mxu0  ;;  %4479 = vmatmul.mubr.msk.f32.gmra.mrb[10].mxu0 %vm289_vm0, %v5441_v42 }
  0xf3   : > { %v5451_v49 = vmax.f32 %v445_v44, 0.0  ;;  %v432_v50 = vmul.f32 %v3882_v20, %v410_v48  ;;  %4491 = vmatprep.mubr.msk.f32.mxu0 %vm289_vm0, %v5426_v31 }
  0xf4   : > { %v448_v51 = vadd.f32 %v3883_v22, %v433_v47 }
  0xf5   : > { %v447_v52 = vadd.f32 %v3883_v22, %v432_v50  ;;  %4481 = vmatprep.mubr.msk.f32.mxu1 %vm289_vm0, %v5451_v49 }
  0xf6   : > { %v5457_v53 = vmax.f32 %v448_v51, 0.0  ;;  %4482 = vmatmul.mubr.msk.f32.vlgmr.msra.gmra.mrb[0].mxu1 %vm289_vm0, %v5447_v46  ;;  %4492 = vmatmul.mubr.msk.f32.vlgmr.msra.gmra.mrb[12].mxu0 %vm289_vm0, %v5428_v33 }
  0xf7   : > { %v5463_v54 = vmax.f32 %v447_v52, 0.0  ;;  %4494 = vmatprep.mubr.msk.f32.mxu0 %vm289_vm0, %v5439_v40  ;;  %4958 = vmatpush3.bf16.msra.mxu1 %v4955_v19  ;;  %v3908_v19 = vld [vmem:[%s6114_s5 + $0x8] ss:$0 sm:$0xff] }
  0xf8   : > { %4520 = vmatpush3.msk.msra.mxu0 %vm853_vm1, %v5435_v37 }
  0xf9   : > { %4484 = vmatprep.mubr.msk.f32.mxu1 %vm289_vm0, %v5463_v54 }
  0xfa   : > { %4485 = vmatmul.mubr.msk.f32.gmra.mrb[2].mxu1 %vm289_vm0, %v5457_v53  ;;  %4495 = vmatmul.mubr.msk.f32.gmra.mrb[14].mxu0 %vm289_vm0, %v5441_v42 }
  0xfb   : > { %4507 = vmatprep.mubr.msk.f32.mxu1 %vm289_vm0, %v5426_v31  ;;  %4497 = vmatprep.mubr.msk.f32.mxu0 %vm289_vm0, %v5451_v49 }
  0xfe   : > { %4508 = vmatmul.mubr.msk.f32.vlgmr.msra.gmra.mrb[4].mxu1 %vm289_vm0, %v5428_v33  ;;  %4498 = vmatmul.mubr.msk.f32.gmra.mrb[16].mxu0 %vm289_vm0, %v5447_v46 }
  0xff   : > { %4510 = vmatprep.mubr.msk.f32.mxu1 %vm289_vm0, %v5439_v40  ;;  %4500 = vmatprep.mubr.msk.f32.mxu0 %vm289_vm0, %v5463_v54 }
 0x102   : > { %4511 = vmatmul.mubr.msk.f32.gmra.mrb[6].mxu1 %vm289_vm0, %v5441_v42  ;;  %4501 = vmatmul.mubr.msk.f32.gmra.mrb[18].mxu0 %vm289_vm0, %v5457_v53 }
 0x103   : > { %4513 = vmatprep.mubr.msk.f32.mxu1 %vm289_vm0, %v5451_v49 }
 0x106   : > { %4514 = vmatmul.mubr.msk.f32.gmra.mrb[8].mxu1 %vm289_vm0, %v5447_v46 }
 0x107   : > { %4516 = vmatprep.mubr.msk.f32.mxu1 %vm289_vm0, %v5463_v54 }
 0x10a   : > { %4517 = vmatmul.mubr.msk.f32.gmra.mrb[10].mxu1 %vm289_vm0, %v5457_v53 }
 0x1c1   : > { %v4477_v56 = vpop.f32.mrb[8].mxu0 }
 0x1c2   : > { %v557_v57 = vpop.f32.mrb[9].mxu0  ;;  %v5502_v59 = vadd.f32 %v4477_v56, %v3884_v55 }
 0x1c3   : > { %v558_v58 = vadd.f32 %v3884_v55, %v557_v57 }
 0x1c5   : > { %v4480_v60 = vpop.f32.mrb[10].mxu0  ;;  %4521 = vmatprep.mubr.msk.f32.mxu0 %vm828_vm2, %v558_v58 }
 0x1c6   : > { %v567_v61 = vpop.f32.mrb[11].mxu0  ;;  %4522 = vmatmul.mubr.msk.f32.vlgmr.msra.gmra.mrb[20].mxu0 %vm828_vm2, %v5502_v59  ;;  %v5512_v0 = vadd.f32 %v4480_v60, %v3884_v55 }
 0x1c7   : > { %v5507_v62 = vadd.f32 %v3884_v55, %v567_v61  ;;  %v3974_v61 = vld [vmem:[%s6113_s4 + $0x90] sm:$0xff] }
 0x1c9   : > { %v4483_v1 = vpop.f32.mrb[0].mxu1  ;;  %v4493_v2 = vpop.f32.mrb[12].mxu0  ;;  %4524 = vmatprep.mubr.msk.f32.mxu0 %vm828_vm2, %v5507_v62 }
 0x1ca   : > { %v5516_v3 = vadd.f32 %v4483_v1, %v3884_v55  ;;  %v679_v4 = vadd.f32 %v4493_v2, %v3896_v63  ;;  %v577_v5 = vpop.f32.mrb[1].mxu1  ;;  %v673_v6 = vpop.f32.mrb[13].mxu0  ;;  %4525 = vmatmul.mubr.msk.f32.gmra.mrb[22].mxu0 %vm828_vm2, %v5512_v0 }
 0x1cb   : > { %v5520_v7 = vadd.f32 %v3884_v55, %v577_v5  ;;  %v674_v8 = vadd.f32 %v3896_v63, %v673_v6 }
 0x1cd   : > { %v4959_v10 = vpack.c.bf16 %v679_v4, %v674_v8  ;;  %v4486_v11 = vpop.f32.mrb[2].mxu1  ;;  %v4496_v12 = vpop.f32.mrb[14].mxu0  ;;  %4527 = vmatprep.mubr.msk.f32.mxu0 %vm828_vm2, %v5520_v7 }
 0x1ce   : > { %v5530_v13 = vadd.f32 %v4486_v11, %v3884_v55  ;;  %v689_v14 = vadd.f32 %v4496_v12, %v3896_v63  ;;  %v587_v15 = vpop.f32.mrb[3].mxu1  ;;  %v683_v16 = vpop.f32.mrb[15].mxu0  ;;  %4528 = vmatmul.mubr.msk.f32.gmra.mrb[24].mxu0 %vm828_vm2, %v5516_v3 }
 0x1cf   : > { %v5534_v17 = vadd.f32 %v3884_v55, %v587_v15  ;;  %v684_v18 = vadd.f32 %v3896_v63, %v683_v16  ;;  %4961 = vmatprep.subr.msk.bf16.mxu0 %vm5524_vm3, %v4959_v10  ;;  %v3977_v15 = vld [vmem:[%s6114_s5 + $0x9] ss:$0 sm:$0xff] }
 0x1d0   : > { %4964 = vmatpush3.bf16.xpose.msk.msra.mxu0 %vm5524_vm3, %v4959_v10 }
 0x1d1   : > { %v4965_v20 = vpack.c.bf16 %v689_v14, %v684_v18  ;;  %v4509_v21 = vpop.f32.mrb[4].mxu1  ;;  %4530 = vmatprep.mubr.msk.f32.mxu0 %vm828_vm2, %v5534_v17  ;;  %v4499_v22 = vpop.f32.mrb[16].mxu0 }
 0x1d2   : > { %v795_v23 = vadd.f32 %v4509_v21, %v3908_v19  ;;  %v789_v24 = vpop.f32.mrb[5].mxu1  ;;  %4531 = vmatmul.mubr.msk.f32.gmra.mrb[26].mxu0 %vm828_vm2, %v5530_v13  ;;  %v699_v25 = vadd.f32 %v4499_v22, %v3896_v63  ;;  %v693_v26 = vpop.f32.mrb[17].mxu0 }
 0x1d3   : > { %v790_v27 = vadd.f32 %v3908_v19, %v789_v24  ;;  %4967 = vmatprep.subr.msk.bf16.mxu0 %vm5524_vm3, %v4965_v20  ;;  %4549 = vmatprep.mubr.msk.f32.mxu0 %vm828_vm2, %v558_v58  ;;  %v694_v28 = vadd.f32 %v3896_v63, %v693_v26 }
 0x1d5   : > { %v4983_v29 = vpack.c.bf16 %v795_v23, %v790_v27  ;;  %v4512_v30 = vpop.f32.mrb[6].mxu1  ;;  %v4971_v32 = vpack.c.bf16 %v699_v25, %v694_v28  ;;  %v4502_v34 = vpop.f32.mrb[18].mxu0 }
 0x1d6   : > { %v805_v35 = vadd.f32 %v4512_v30, %v3908_v19  ;;  %v799_v36 = vpop.f32.mrb[7].mxu1  ;;  %v709_v38 = vadd.f32 %v4502_v34, %v3896_v63  ;;  %v703_v39 = vpop.f32.mrb[19].mxu0 }
 0x1d7   : > { %v800_v41 = vadd.f32 %v3908_v19, %v799_v36  ;;  %4984 = vmatprep.subr.bf16.mxu1 %v4983_v29  ;;  %v704_v43 = vadd.f32 %v3896_v63, %v703_v39  ;;  %v3975_v63 = vld [vmem:[%s6113_s4 + $0x98] sm:$0xff] }
 0x1d8   : > { %4970 = vmatpush3.bf16.xpose.msk.msra.mxu0 %vm5524_vm3, %v4965_v20  ;;  %4986 = vmatpush3.bf16.msra.mxu1 %v4983_v29  ;;  %v5007_v1 = vpack.c.bf16 %v3975_v63, %v3974_v61 }
 0x1d9   : > { %v4987_v44 = vpack.c.bf16 %v805_v35, %v800_v41  ;;  %v4515_v45 = vpop.f32.mrb[8].mxu1  ;;  %4973 = vmatprep.subr.msk.bf16.mxu0 %vm5524_vm3, %v4971_v32  ;;  %v4977_v47 = vpack.c.bf16 %v709_v38, %v704_v43 }
 0x1da   : > { %v815_v48 = vadd.f32 %v4515_v45, %v3908_v19  ;;  %v809_v50 = vpop.f32.mrb[9].mxu1 }
 0x1db   : > { %v810_v51 = vadd.f32 %v3908_v19, %v809_v50  ;;  %4988 = vmatprep.subr.bf16.mxu1 %v4987_v44 }
 0x1dc   : > { %4990 = vmatpush3.bf16.msra.mxu1 %v4987_v44 }
 0x1dd   : > { %v4991_v52 = vpack.c.bf16 %v815_v48, %v810_v51  ;;  %v4518_v55 = vpop.f32.mrb[10].mxu1 }
 0x1de   : > { %v825_v56 = vadd.f32 %v4518_v55, %v3908_v19  ;;  %v819_v57 = vpop.f32.mrb[11].mxu1 }
 0x1df   : > { %v820_v58 = vadd.f32 %v3908_v19, %v819_v57  ;;  %4992 = vmatprep.subr.bf16.mxu1 %v4991_v52 }
 0x1e0   : > { %4976 = vmatpush3.bf16.xpose.msk.msra.mxu0 %vm5524_vm3, %v4971_v32  ;;  %4994 = vmatpush3.bf16.msra.mxu1 %v4991_v52 }
 0x1e1   : > { %v4995_v60 = vpack.c.bf16 %v825_v56, %v820_v58  ;;  %4979 = vmatprep.subr.msk.bf16.mxu0 %vm5524_vm3, %v4977_v47 }
 0x1e3   : > { %4996 = vmatprep.subr.bf16.mxu1 %v4995_v60 }
 0x1e4   : > { %4998 = vmatpush3.bf16.msra.mxu1 %v4995_v60 }
 0x1e8   : > { %4982 = vmatpush3.bf16.xpose.msk.msra.mxu0 %vm5524_vm3, %v4977_v47 }
 0x1e9   : > { %5008 = vmatprep.subr.bf16.mxu0 %v5007_v1 }
 0x1ef   : > { %4550 = vmatmul.mubr.msk.f32.vlgmr.msra.gmra.mrb[20].mxu0 %vm828_vm2, %v5502_v59 }
 0x1f0   : > { %4552 = vmatprep.mubr.msk.f32.mxu0 %vm828_vm2, %v5507_v62  ;;  %5010 = vmatpush3.bf16.msra.mxu0 %v5007_v1 }
 0x1f3   : > { %4553 = vmatmul.mubr.msk.f32.gmra.mrb[22].mxu0 %vm828_vm2, %v5512_v0 }
 0x1f4   : > { %4555 = vmatprep.mubr.msk.f32.mxu0 %vm828_vm2, %v5520_v7 }
 0x1f7   : > { %4556 = vmatmul.mubr.msk.f32.gmra.mrb[24].mxu0 %vm828_vm2, %v5516_v3 }
 0x1f8   : > { %4558 = vmatprep.mubr.msk.f32.mxu0 %vm828_vm2, %v5534_v17 }
 0x1fb   : > { %4559 = vmatmul.mubr.msk.f32.gmra.mrb[26].mxu0 %vm828_vm2, %v5530_v13 }
 0x1fc   : > { %4625 = vmatprep.mubr.msk.f32.mxu0 %vm289_vm0, %v5426_v31 }
 0x1ff   : > { %4626 = vmatmul.mubr.msk.f32.vlgmr.msra.gmra.mrb[28].mxu0 %vm289_vm0, %v5428_v33 }
 0x200   : > { %4628 = vmatprep.mubr.msk.f32.mxu0 %vm289_vm0, %v5439_v40 }
 0x203   : > { %4629 = vmatmul.mubr.msk.f32.gmra.mrb[30].mxu0 %vm289_vm0, %v5441_v42 }
 0x204   : > { %4631 = vmatprep.mubr.msk.f32.mxu0 %vm289_vm0, %v5451_v49 }
 0x207   : > { %4632 = vmatmul.mubr.msk.f32.gmra.mrb[32].mxu0 %vm289_vm0, %v5447_v46 }
 0x208   : > { %4634 = vmatprep.mubr.msk.f32.mxu0 %vm289_vm0, %v5463_v54 }
 0x20b   : > { %4635 = vmatmul.mubr.msk.f32.gmra.mrb[34].mxu0 %vm289_vm0, %v5457_v53 }
 0x2c2   : > { %v4551_v59 = vpop.f32.mrb[20].mxu0 }
 0x2c3   : > { %v1052_v62 = vpop.f32.mrb[21].mxu0  ;;  %v1095_v4 = vsel %vm1091_vm4, %v4551_v59, -inf }
 0x2c4   : > { %v1092_v0 = vsel %vm1091_vm4, %v1052_v62, -inf }
 0x2c5   : > { %1093 = vmax.xlane.f32.xlu0 %v1092_v0 }
 0x2c6   : > { %v5597_v2 = vpop.f32.mrb[22].mxu0 }
 0x2c7   : > { %v1062_v3 = vpop.f32.mrb[23].mxu0  ;;  %v1101_v8 = vsel %vm1091_vm4, %v5597_v2, -inf }
 0x2c8   : > { %v1098_v5 = vsel %vm1091_vm4, %v1062_v3, -inf }
 0x2c9   : > { %1096 = vmax.xlane.f32.xlu0 %v1095_v4  ;;  %1099 = vmax.xlane.f32.xlu1 %v1098_v5 }
 0x2ca   : > { %v5601_v6 = vpop.f32.mrb[24].mxu0 }
 0x2cb   : > { %v1072_v7 = vpop.f32.mrb[25].mxu0  ;;  %v1107_v13 = vsel %vm1091_vm4, %v5601_v6, -inf }
 0x2cc   : > { %v1104_v10 = vsel %vm1091_vm4, %v1072_v7, -inf }
 0x2cd   : > { %1102 = vmax.xlane.f32.xlu1 %v1101_v8  ;;  %1105 = vmax.xlane.f32.xlu0 %v1104_v10 }
 0x2ce   : > { %v5606_v11 = vpop.f32.mrb[26].mxu0 }
 0x2cf   : > { %v1082_v12 = vpop.f32.mrb[27].mxu0  ;;  %v1113_v20 = vsel %vm1091_vm4, %v5606_v11, -inf }
 0x2d0   : > { %v1110_v14 = vsel %vm1091_vm4, %v1082_v12, -inf }
 0x2d1   : > { %1108 = vmax.xlane.f32.xlu1 %v1107_v13  ;;  %1111 = vmax.xlane.f32.xlu0 %v1110_v14 }
 0x2d2   : > { %v4627_v16 = vpop.f32.mrb[28].mxu0 }
 0x2d3   : > { %v1632_v17 = vadd.f32 %v4627_v16, %v3977_v15  ;;  %v1626_v18 = vpop.f32.mrb[29].mxu0 }
 0x2d4   : > { %v1627_v19 = vadd.f32 %v3977_v15, %v1626_v18 }
 0x2d5   : > { %1114 = vmax.xlane.f32.xlu1 %v1113_v20 }
 0x2d6   : > { %v5035_v21 = vpack.c.bf16 %v1632_v17, %v1627_v19  ;;  %v4630_v22 = vpop.f32.mrb[30].mxu0 }
 0x2d7   : > { %v1642_v23 = vadd.f32 %v4630_v22, %v3977_v15  ;;  %v1636_v24 = vpop.f32.mrb[31].mxu0 }
 0x2d8   : > { %v1637_v25 = vadd.f32 %v3977_v15, %v1636_v24  ;;  %5036 = vmatprep.subr.bf16.mxu0 %v5035_v21  ;;  %v3951_v24 = vld [vmem:[%s6113_s4 + $0x18] sm:$0xff] }
 0x2d9   : > { %5038 = vmatpush3.bf16.msra.mxu0 %v5035_v21 }
 0x2da   : > { %v5039_v26 = vpack.c.bf16 %v1642_v23, %v1637_v25  ;;  %v4633_v27 = vpop.f32.mrb[32].mxu0  ;;  %v3950_v23 = vld [vmem:[%s6113_s4 + $0x10] sm:$0xff] }
 0x2db   : > { %v1652_v28 = vadd.f32 %v4633_v27, %v3977_v15  ;;  %v1646_v29 = vpop.f32.mrb[33].mxu0  ;;  %v4999_v25 = vpack.c.bf16 %v3951_v24, %v3950_v23 }
 0x2dc   : > { %v1647_v30 = vadd.f32 %v3977_v15, %v1646_v29  ;;  %5040 = vmatprep.subr.bf16.mxu0 %v5039_v26 }
 0x2dd   : > { %5042 = vmatpush3.bf16.msra.mxu0 %v5039_v26  ;;  %5000 = vmatprep.subr.bf16.mxu1 %v4999_v25 }
 0x2de   : > { %v5043_v32 = vpack.c.bf16 %v1652_v28, %v1647_v30  ;;  %v4636_v34 = vpop.f32.mrb[34].mxu0 }
 0x2df   : > { %v1662_v35 = vadd.f32 %v4636_v34, %v3977_v15  ;;  %v1656_v36 = vpop.f32.mrb[35].mxu0 }
 0x2e0   : > { %v1657_v38 = vadd.f32 %v3977_v15, %v1656_v36  ;;  %5044 = vmatprep.subr.bf16.mxu0 %v5043_v32 }
 0x2e1   : > { %5046 = vmatpush3.bf16.msra.mxu0 %v5043_v32 }
 0x2e2   : > { %v5047_v39 = vpack.c.bf16 %v1662_v35, %v1657_v38  ;;  %v3962_v38 = vld [vmem:[%s6113_s4 + $0x50] sm:$0xff] }
 0x2e4   : > { %5048 = vmatprep.subr.bf16.mxu0 %v5047_v39 }
 0x2e5   : > { %5050 = vmatpush3.bf16.msra.mxu0 %v5047_v39  ;;  %v3963_v39 = vld [vmem:[%s6113_s4 + $0x58] sm:$0xff] }
 0x352   : > { %v1094_v41 = vpop.xlane.xlu0 %1093 }
 0x353   : > { %v1116_v43 = vsub.f32 %v1052_v62, %v1094_v41 }
 0x355   : > { %v1124_v44 = vmul.f32 1.442695, %v1116_v43 }
 0x356   : > { %v1097_v45 = vpop.xlane.xlu0 %1096  ;;  %v1100_v47 = vpop.xlane.xlu1 %1099 }
 0x357   : > { %5197 = vpow2.f32 %v1124_v44  ;;  %v1117_v48 = vsub.f32 %v4551_v59, %v1097_v45  ;;  %v1118_v50 = vsub.f32 %v1062_v3, %v1100_v47  ;;  %v5003_v47 = vpack.c.bf16 %v3963_v39, %v3962_v38 }
 0x359   : > { %v1126_v51 = vmul.f32 1.442695, %v1117_v48  ;;  %v1128_v52 = vmul.f32 1.442695, %v1118_v50 }
 0x35a   : > { %v1103_v55 = vpop.xlane.xlu1 %1102  ;;  %v1106_v56 = vpop.xlane.xlu0 %1105 }
 0x35b   : > { %5199 = vpow2.f32 %v1126_v51  ;;  %v1119_v57 = vsub.f32 %v5597_v2, %v1103_v55  ;;  %v1120_v58 = vsub.f32 %v1072_v7, %v1106_v56 }
 0x35c   : > { %5201 = vpow2.f32 %v1128_v52 }
 0x35d   : > { %v1130_v60 = vmul.f32 1.442695, %v1119_v57  ;;  %v1132_v61 = vmul.f32 1.442695, %v1120_v58 }
 0x35e   : > { %v1109_v63 = vpop.xlane.xlu1 %1108  ;;  %v1112_v1 = vpop.xlane.xlu0 %1111 }
 0x35f   : > { %5203 = vpow2.f32 %v1130_v60  ;;  %v1121_v62 = vsub.f32 %v5601_v6, %v1109_v63  ;;  %v1122_v0 = vsub.f32 %v1082_v12, %v1112_v1 }
 0x360   : > { %5205 = vpow2.f32 %v1132_v61 }
 0x361   : > { %v5198_v59 = vpop.eup %5197  ;;  %v1134_v3 = vmul.f32 1.442695, %v1121_v62  ;;  %v1136_v4 = vmul.f32 1.442695, %v1122_v0 }
 0x362   : > { %v1115_v5 = vpop.xlane.xlu1 %1114  ;;  %v1140_v8 = vsel %vm1091_vm4, %v5198_v59, 0.0 }
 0x363   : > { %5207 = vpow2.f32 %v1134_v3  ;;  %v1123_v2 = vsub.f32 %v5606_v11, %v1115_v5  ;;  %1141 = vadd.xlane.f32.xlu0 %v1140_v8  ;;  %v3953_v8 = vld [vmem:[%s6114_s5 + $0x1] ss:$0 sm:$0xff] }
 0x364   : > { %5209 = vpow2.f32 %v1136_v4 }
 0x365   : > { %v5200_v7 = vpop.eup %5199  ;;  %v1138_v10 = vmul.f32 1.442695, %v1123_v2 }
 0x366   : > { %v5202_v13 = vpop.eup %5201  ;;  %v1143_v14 = vsel %vm1091_vm4, %v5200_v7, 0.0 }
 0x367   : > { %5211 = vpow2.f32 %v1138_v10  ;;  %1144 = vadd.xlane.f32.xlu1 %v1143_v14  ;;  %v1146_v6 = vsel %vm1091_vm4, %v5202_v13, 0.0 }
 0x368   : > { %1147 = vadd.xlane.f32.xlu0 %v1146_v6 }
 0x369   : > { %v5204_v12 = vpop.eup %5203 }
 0x36a   : > { %v5206_v15 = vpop.eup %5205  ;;  %v1149_v16 = vsel %vm1091_vm4, %v5204_v12, 0.0 }
 0x36b   : > { %1150 = vadd.xlane.f32.xlu1 %v1149_v16  ;;  %v1152_v17 = vsel %vm1091_vm4, %v5206_v15, 0.0 }
 0x36c   : > { %1153 = vadd.xlane.f32.xlu0 %v1152_v17 }
 0x36d   : > { %v5208_v11 = vpop.eup %5207 }
 0x36e   : > { %v5210_v18 = vpop.eup %5209  ;;  %v1155_v19 = vsel %vm1091_vm4, %v5208_v11, 0.0 }
 0x36f   : > { %1156 = vadd.xlane.f32.xlu1 %v1155_v19  ;;  %v1158_v20 = vsel %vm1091_vm4, %v5210_v18, 0.0 }
 0x370   : > { %1159 = vadd.xlane.f32.xlu0 %v1158_v20 }
 0x371   : > { %v5212_v21 = vpop.eup %5211 }
 0x372   : > { %v1161_v22 = vsel %vm1091_vm4, %v5212_v21, 0.0 }
 0x373   : > { %1162 = vadd.xlane.f32.xlu1 %v1161_v22  ;;  %v3965_v22 = vld [vmem:[%s6114_s5 + $0x5] ss:$0 sm:$0xff] }
 0x3f0   : > { %v1142_v26 = vpop.xlane.xlu0 %1141 }
 0x3f1   : > { %5213 = vrcp.f32 %v1142_v26 }
 0x3f4   : > { %v1145_v27 = vpop.xlane.xlu1 %1144 }
 0x3f5   : > { %5215 = vrcp.f32 %v1145_v27  ;;  %v1148_v28 = vpop.xlane.xlu0 %1147 }
 0x3f6   : > { %5217 = vrcp.f32 %v1148_v28 }
 0x3f8   : > { %v1151_v29 = vpop.xlane.xlu1 %1150 }
 0x3f9   : > { %5219 = vrcp.f32 %v1151_v29  ;;  %v1154_v30 = vpop.xlane.xlu0 %1153 }
 0x3fa   : > { %5221 = vrcp.f32 %v1154_v30 }
 0x3fb   : > { %v5214_v32 = vpop.eup %5213 }
 0x3fc   : > { %v1157_v34 = vpop.xlane.xlu1 %1156  ;;  %v1172_v35 = vmul.f32 %v5214_v32, %v5198_v59 }
 0x3fd   : > { %5223 = vrcp.f32 %v1157_v34  ;;  %v1160_v36 = vpop.xlane.xlu0 %1159 }
 0x3fe   : > { %5225 = vrcp.f32 %v1160_v36  ;;  %4577 = vmatprep.mubr.msk.f32.mxu1 %vm1091_vm4, %v1172_v35 }
 0x3ff   : > { %v5216_v41 = vpop.eup %5215 }
 0x400   : > { %v5218_v43 = vpop.eup %5217  ;;  %v1173_v44 = vmul.f32 %v5216_v41, %v5200_v7  ;;  %v1163_v45 = vpop.xlane.xlu1 %1162 }
 0x401   : > { %5227 = vrcp.f32 %v1163_v45  ;;  %v1174_v48 = vmul.f32 %v5218_v43, %v5202_v13 }
 0x402   : > { %4578 = vmatmul.mubr.msk.f32.vlgmr.msra.gmra.mrb[12].mxu1 %vm1091_vm4, %v1173_v44 }
 0x403   : > { %v5220_v50 = vpop.eup %5219  ;;  %5002 = vmatpush3.bf16.msra.mxu1 %v4999_v25  ;;  %4580 = vmatprep.mubr.msk.f32.mxu1 %vm1091_vm4, %v1174_v48 }
 0x404   : > { %v5222_v51 = vpop.eup %5221  ;;  %v1175_v52 = vmul.f32 %v5220_v50, %v5204_v12  ;;  %5004 = vmatprep.subr.bf16.mxu1 %v5003_v47 }
 0x405   : > { %v1176_v55 = vmul.f32 %v5222_v51, %v5206_v15  ;;  %v4043_v51 = vld [vmem:[%s6113_s4 + $0xa0] sm:$0xff] }
 0x406   : > { %4581 = vmatmul.mubr.msk.f32.gmra.mrb[14].mxu1 %vm1091_vm4, %v1175_v52  ;;  %v4044_v52 = vld [vmem:[%s6113_s4 + $0xa8] sm:$0xff] }
 0x407   : > { %v5224_v56 = vpop.eup %5223  ;;  %4583 = vmatprep.mubr.msk.f32.mxu1 %vm1091_vm4, %v1176_v55  ;;  %v5059_v55 = vpack.c.bf16 %v4044_v52, %v4043_v51 }
 0x408   : > { %v5226_v57 = vpop.eup %5225  ;;  %v1177_v58 = vmul.f32 %v5224_v56, %v5208_v11 }
 0x409   : > { %v1178_v60 = vmul.f32 %v5226_v57, %v5210_v18 }
 0x40a   : > { %4584 = vmatmul.mubr.msk.f32.gmra.mrb[16].mxu1 %vm1091_vm4, %v1177_v58 }
 0x40b   : > { %v5228_v61 = vpop.eup %5227  ;;  %4586 = vmatprep.mubr.msk.f32.mxu1 %vm1091_vm4, %v1178_v60 }
 0x40c   : > { %v1179_v63 = vmul.f32 %v5228_v61, %v5212_v21 }
 0x40e   : > { %4587 = vmatmul.mubr.msk.f32.gmra.mrb[18].mxu1 %vm1091_vm4, %v1179_v63 }
 0x40f   : > { %4593 = vmatprep.mubr.msk.f32.mxu1 %vm289_vm0, %v5426_v31 }
 0x412   : > { %4594 = vmatmul.mubr.msk.f32.vlgmr.msra.gmra.mrb[20].mxu1 %vm289_vm0, %v5428_v33 }
 0x413   : > { %5006 = vmatpush3.bf16.msra.mxu1 %v5003_v47  ;;  %4596 = vmatprep.mubr.msk.f32.mxu1 %vm289_vm0, %v5439_v40 }
 0x414   : > { %4637 = vmatprep.subr.msk.mxu1 %vm853_vm1, %v5435_v37 }
 0x416   : > { %4597 = vmatmul.mubr.msk.f32.gmra.mrb[22].mxu1 %vm289_vm0, %v5441_v42 }
 0x417   : > { %4599 = vmatprep.mubr.msk.f32.mxu1 %vm289_vm0, %v5451_v49 }
 0x41a   : > { %4600 = vmatmul.mubr.msk.f32.gmra.mrb[24].mxu1 %vm289_vm0, %v5447_v46 }
 0x41b   : > { %4602 = vmatprep.mubr.msk.f32.mxu1 %vm289_vm0, %v5463_v54 }
 0x41e   : > { %4603 = vmatmul.mubr.msk.f32.gmra.mrb[26].mxu1 %vm289_vm0, %v5457_v53 }
 0x41f   : > { %4609 = vmatprep.mubr.msk.f32.mxu1 %vm289_vm0, %v5426_v31 }
 0x422   : > { %4610 = vmatmul.mubr.msk.f32.vlgmr.msra.gmra.mrb[28].mxu1 %vm289_vm0, %v5428_v33 }
 0x423   : > { %4612 = vmatprep.mubr.msk.f32.mxu1 %vm289_vm0, %v5439_v40  ;;  %4638 = vmatpush3.msk.msra.mxu1 %vm853_vm1, %v5435_v37 }
 0x426   : > { %4613 = vmatmul.mubr.msk.f32.gmra.mrb[30].mxu1 %vm289_vm0, %v5441_v42 }
 0x427   : > { %4615 = vmatprep.mubr.msk.f32.mxu1 %vm289_vm0, %v5451_v49 }
 0x42a   : > { %4616 = vmatmul.mubr.msk.f32.gmra.mrb[32].mxu1 %vm289_vm0, %v5447_v46 }
 0x42b   : > { %4618 = vmatprep.mubr.msk.f32.mxu1 %vm289_vm0, %v5463_v54 }
 0x42e   : > { %4619 = vmatmul.mubr.msk.f32.gmra.mrb[34].mxu1 %vm289_vm0, %v5457_v53 }
 0x4d5   : > { %v4579_v37 = vpop.f32.mrb[12].mxu1 }
 0x4d6   : > { %1310 = vst.msk [vmem:[%s5687_s10 + $0x8] sm:$0xff] %vm828_vm2, %v4579_v37  ;;  %v1270_v1 = vpop.f32.mrb[13].mxu1 }
 0x4d7   : > { %1309 = vst.msk [vmem:[%s5687_s10] sm:$0xff] %vm828_vm2, %v1270_v1 }
 0x4d9   : > { %v4582_v62 = vpop.f32.mrb[14].mxu1 }
 0x4da   : > { %1312 = vst.msk [vmem:[%s5687_s10 + $0x18] sm:$0xff] %vm828_vm2, %v4582_v62  ;;  %v1280_v0 = vpop.f32.mrb[15].mxu1 }
 0x4db   : > { %1311 = vst.msk [vmem:[%s5687_s10 + $0x10] sm:$0xff] %vm828_vm2, %v1280_v0 }
 0x4dd   : > { %v4585_v59 = vpop.f32.mrb[16].mxu1 }
 0x4de   : > { %1314 = vst.msk [vmem:[%s5687_s10 + $0x28] sm:$0xff] %vm828_vm2, %v4585_v59  ;;  %v1290_v3 = vpop.f32.mrb[17].mxu1 }
 0x4df   : > { %1313 = vst.msk [vmem:[%s5687_s10 + $0x20] sm:$0xff] %vm828_vm2, %v1290_v3 }
 0x4e1   : > { %v4588_v4 = vpop.f32.mrb[18].mxu1 }
 0x4e2   : > { %1316 = vst.msk [vmem:[%s5687_s10 + $0x38] sm:$0xff] %vm828_vm2, %v4588_v4  ;;  %v1300_v5 = vpop.f32.mrb[19].mxu1 }
 0x4e3   : > { %1315 = vst.msk [vmem:[%s5687_s10 + $0x30] sm:$0xff] %vm828_vm2, %v1300_v5 }
 0x4e5   : > { %v4595_v2 = vpop.f32.mrb[20].mxu1 }
 0x4e6   : > { %v1394_v7 = vpop.f32.mrb[21].mxu1  ;;  %v1400_v13 = vadd.f32 %v4595_v2, %v3953_v8 }
 0x4e7   : > { %v1395_v10 = vadd.f32 %v3953_v8, %v1394_v7  ;;  %v4046_v7 = vld [vmem:[%s6114_s5 + $0xa] ss:$0 sm:$0xff] }
 0x4e9   : > { %v4598_v14 = vpop.f32.mrb[22].mxu1  ;;  %4639 = vmatprep.mubr.msk.f32.mxu1 %vm828_vm2, %v1395_v10 }
 0x4ea   : > { %v1404_v6 = vpop.f32.mrb[23].mxu1  ;;  %4640 = vmatmul.mubr.msk.f32.vlgmr.msra.gmra.mrb[36].mxu1 %vm828_vm2, %v1400_v13  ;;  %v1410_v15 = vadd.f32 %v4598_v14, %v3953_v8 }
 0x4eb   : > { %v1405_v12 = vadd.f32 %v3953_v8, %v1404_v6 }
 0x4ed   : > { %v4601_v16 = vpop.f32.mrb[24].mxu1  ;;  %4642 = vmatprep.mubr.msk.f32.mxu1 %vm828_vm2, %v1405_v12 }
 0x4ee   : > { %v1414_v17 = vpop.f32.mrb[25].mxu1  ;;  %4643 = vmatmul.mubr.msk.f32.gmra.mrb[38].mxu1 %vm828_vm2, %v1410_v15  ;;  %v1420_v18 = vadd.f32 %v4601_v16, %v3953_v8 }
 0x4ef   : > { %v1415_v11 = vadd.f32 %v3953_v8, %v1414_v17 }
 0x4f1   : > { %v4604_v19 = vpop.f32.mrb[26].mxu1  ;;  %4645 = vmatprep.mubr.msk.f32.mxu1 %vm828_vm2, %v1415_v11 }
 0x4f2   : > { %v1424_v20 = vpop.f32.mrb[27].mxu1  ;;  %4646 = vmatmul.mubr.msk.f32.gmra.mrb[40].mxu1 %vm828_vm2, %v1420_v18  ;;  %v1430_v23 = vadd.f32 %v4604_v19, %v3953_v8 }
 0x4f3   : > { %v1425_v21 = vadd.f32 %v3953_v8, %v1424_v20 }
 0x4f5   : > { %v4611_v24 = vpop.f32.mrb[28].mxu1  ;;  %4648 = vmatprep.mubr.msk.f32.mxu1 %vm828_vm2, %v1425_v21 }
 0x4f6   : > { %v1516_v25 = vadd.f32 %v4611_v24, %v3965_v22  ;;  %v1510_v26 = vpop.f32.mrb[29].mxu1  ;;  %4649 = vmatmul.mubr.msk.f32.gmra.mrb[42].mxu1 %vm828_vm2, %v1430_v23 }
 0x4f7   : > { %v1511_v27 = vadd.f32 %v3965_v22, %v1510_v26  ;;  %4667 = vmatprep.mubr.msk.f32.mxu1 %vm828_vm2, %v1395_v10 }
 0x4f9   : > { %v5011_v28 = vpack.c.bf16 %v1516_v25, %v1511_v27  ;;  %v4614_v29 = vpop.f32.mrb[30].mxu1 }
 0x4fa   : > { %v1526_v30 = vadd.f32 %v4614_v29, %v3965_v22  ;;  %v1520_v32 = vpop.f32.mrb[31].mxu1 }
 0x4fb   : > { %v1521_v34 = vadd.f32 %v3965_v22, %v1520_v32  ;;  %5013 = vmatprep.subr.msk.bf16.mxu1 %vm5524_vm3, %v5011_v28 }
 0x4fc   : > { %5016 = vmatpush3.bf16.xpose.msk.msra.mxu1 %vm5524_vm3, %v5011_v28 }
 0x4fd   : > { %v5017_v35 = vpack.c.bf16 %v1526_v30, %v1521_v34  ;;  %v4617_v36 = vpop.f32.mrb[32].mxu1 }
 0x4fe   : > { %v1536_v38 = vadd.f32 %v4617_v36, %v3965_v22  ;;  %v1530_v39 = vpop.f32.mrb[33].mxu1 }
 0x4ff   : > { %v1531_v41 = vadd.f32 %v3965_v22, %v1530_v39  ;;  %5019 = vmatprep.subr.msk.bf16.mxu1 %vm5524_vm3, %v5017_v35 }
 0x501   : > { %v5023_v43 = vpack.c.bf16 %v1536_v38, %v1531_v41  ;;  %v4620_v44 = vpop.f32.mrb[34].mxu1 }
 0x502   : > { %v1546_v45 = vadd.f32 %v4620_v44, %v3965_v22  ;;  %v1540_v47 = vpop.f32.mrb[35].mxu1 }
 0x503   : > { %v1541_v48 = vadd.f32 %v3965_v22, %v1540_v47 }
 0x504   : > { %5022 = vmatpush3.bf16.xpose.msk.msra.mxu1 %vm5524_vm3, %v5017_v35 }
 0x505   : > { %v5029_v50 = vpack.c.bf16 %v1546_v45, %v1541_v48  ;;  %5025 = vmatprep.subr.msk.bf16.mxu1 %vm5524_vm3, %v5023_v43 }
 0x50c   : > { %5028 = vmatpush3.bf16.xpose.msk.msra.mxu1 %vm5524_vm3, %v5023_v43 }
 0x50d   : > { %5031 = vmatprep.subr.msk.bf16.mxu1 %vm5524_vm3, %v5029_v50 }
 0x514   : > { %5034 = vmatpush3.bf16.xpose.msk.msra.mxu1 %vm5524_vm3, %v5029_v50 }
 0x515   : > { %5060 = vmatprep.subr.bf16.mxu1 %v5059_v55 }
 0x51b   : > { %4668 = vmatmul.mubr.msk.f32.vlgmr.msra.gmra.mrb[36].mxu1 %vm828_vm2, %v1400_v13 }
 0x51c   : > { %4670 = vmatprep.mubr.msk.f32.mxu1 %vm828_vm2, %v1405_v12  ;;  %5062 = vmatpush3.bf16.msra.mxu1 %v5059_v55 }
 0x51f   : > { %4671 = vmatmul.mubr.msk.f32.gmra.mrb[38].mxu1 %vm828_vm2, %v1410_v15 }
 0x520   : > { %4673 = vmatprep.mubr.msk.f32.mxu1 %vm828_vm2, %v1415_v11 }
 0x523   : > { %4674 = vmatmul.mubr.msk.f32.gmra.mrb[40].mxu1 %vm828_vm2, %v1420_v18 }
 0x524   : > { %4676 = vmatprep.mubr.msk.f32.mxu1 %vm828_vm2, %v1425_v21 }
 0x527   : > { %4677 = vmatmul.mubr.msk.f32.gmra.mrb[42].mxu1 %vm828_vm2, %v1430_v23 }
 0x528   : > { %4743 = vmatprep.mubr.msk.f32.mxu1 %vm289_vm0, %v5426_v31 }
 0x52b   : > { %4744 = vmatmul.mubr.msk.f32.vlgmr.msra.gmra.mrb[44].mxu1 %vm289_vm0, %v5428_v33 }
 0x52c   : > { %4746 = vmatprep.mubr.msk.f32.mxu1 %vm289_vm0, %v5439_v40 }
 0x52f   : > { %4747 = vmatmul.mubr.msk.f32.gmra.mrb[46].mxu1 %vm289_vm0, %v5441_v42 }
 0x530   : > { %4749 = vmatprep.mubr.msk.f32.mxu1 %vm289_vm0, %v5451_v49 }
 0x533   : > { %4750 = vmatmul.mubr.msk.f32.gmra.mrb[48].mxu1 %vm289_vm0, %v5447_v46 }
 0x534   : > { %4752 = vmatprep.mubr.msk.f32.mxu1 %vm289_vm0, %v5463_v54 }
 0x537   : > { %4753 = vmatmul.mubr.msk.f32.gmra.mrb[50].mxu1 %vm289_vm0, %v5457_v53 }
 0x5ee   : > { %v4669_v56 = vpop.f32.mrb[36].mxu1 }
 0x5ef   : > { %v1884_v57 = vpop.f32.mrb[37].mxu1  ;;  %v1926_v58 = vsel %vm1091_vm4, %v4669_v56, -inf }
 0x5f0   : > { %1927 = vmax.xlane.f32.xlu1 %v1926_v58  ;;  %v1923_v60 = vsel %vm1091_vm4, %v1884_v57, -inf }
 0x5f1   : > { %1924 = vmax.xlane.f32.xlu0 %v1923_v60 }
 0x5f2   : > { %v4672_v61 = vpop.f32.mrb[38].mxu1 }
 0x5f3   : > { %v1894_v63 = vpop.f32.mrb[39].mxu1  ;;  %v1932_v37 = vsel %vm1091_vm4, %v4672_v61, -inf }
 0x5f4   : > { %1933 = vmax.xlane.f32.xlu1 %v1932_v37  ;;  %v1929_v1 = vsel %vm1091_vm4, %v1894_v63, -inf }
 0x5f5   : > { %1930 = vmax.xlane.f32.xlu0 %v1929_v1 }
 0x5f6   : > { %v4675_v62 = vpop.f32.mrb[40].mxu1 }
 0x5f7   : > { %v1904_v0 = vpop.f32.mrb[41].mxu1  ;;  %v1938_v59 = vsel %vm1091_vm4, %v4675_v62, -inf }
 0x5f8   : > { %1939 = vmax.xlane.f32.xlu1 %v1938_v59  ;;  %v1935_v3 = vsel %vm1091_vm4, %v1904_v0, -inf }
 0x5f9   : > { %1936 = vmax.xlane.f32.xlu0 %v1935_v3 }
 0x5fa   : > { %v5771_v4 = vpop.f32.mrb[42].mxu1 }
 0x5fb   : > { %v5773_v5 = vpop.f32.mrb[43].mxu1  ;;  %v1944_v8 = vsel %vm1091_vm4, %v5771_v4, -inf }
 0x5fc   : > { %1945 = vmax.xlane.f32.xlu1 %v1944_v8  ;;  %v1941_v2 = vsel %vm1091_vm4, %v5773_v5, -inf }
 0x5fd   : > { %1942 = vmax.xlane.f32.xlu0 %v1941_v2 }
 0x5fe   : > { %v4745_v10 = vpop.f32.mrb[44].mxu1 }
 0x5ff   : > { %v2463_v13 = vadd.f32 %v4745_v10, %v4046_v7  ;;  %v2457_v14 = vpop.f32.mrb[45].mxu1 }
 0x600   : > { %v2458_v6 = vadd.f32 %v4046_v7, %v2457_v14 }
 0x602   : > { %v5087_v12 = vpack.c.bf16 %v2463_v13, %v2458_v6  ;;  %v4748_v15 = vpop.f32.mrb[46].mxu1 }
 0x603   : > { %v2473_v16 = vadd.f32 %v4748_v15, %v4046_v7  ;;  %v2467_v17 = vpop.f32.mrb[47].mxu1  ;;  %v4019_v15 = vld [vmem:[%s6113_s4 + $0x20] sm:$0xff] }
 0x604   : > { %v2468_v11 = vadd.f32 %v4046_v7, %v2467_v17  ;;  %5088 = vmatprep.subr.bf16.mxu1 %v5087_v12 }
 0x605   : > { %5090 = vmatpush3.bf16.msra.mxu1 %v5087_v12 }
 0x606   : > { %v5091_v18 = vpack.c.bf16 %v2473_v16, %v2468_v11  ;;  %v4751_v19 = vpop.f32.mrb[48].mxu1  ;;  %v4020_v16 = vld [vmem:[%s6113_s4 + $0x28] sm:$0xff] }
 0x607   : > { %v2483_v20 = vadd.f32 %v4751_v19, %v4046_v7  ;;  %v2477_v21 = vpop.f32.mrb[49].mxu1  ;;  %v5051_v17 = vpack.c.bf16 %v4020_v16, %v4019_v15  ;;  %v4034_v15 = vld [vmem:[%s6114_s5 + $0x6] ss:$0 sm:$0xff] }
 0x608   : > { %v2478_v22 = vadd.f32 %v4046_v7, %v2477_v21  ;;  %5092 = vmatprep.subr.bf16.mxu1 %v5091_v18 }
 0x609   : > { %5094 = vmatpush3.bf16.msra.mxu1 %v5091_v18  ;;  %5052 = vmatprep.subr.bf16.mxu0 %v5051_v17 }
 0x60a   : > { %v5095_v23 = vpack.c.bf16 %v2483_v20, %v2478_v22  ;;  %v4754_v24 = vpop.f32.mrb[50].mxu1 }
 0x60b   : > { %v2493_v25 = vadd.f32 %v4754_v24, %v4046_v7  ;;  %v2487_v26 = vpop.f32.mrb[51].mxu1  ;;  %v4031_v24 = vld [vmem:[%s6113_s4 + $0x60] sm:$0xff] }
 0x60c   : > { %v2488_v27 = vadd.f32 %v4046_v7, %v2487_v26  ;;  %5096 = vmatprep.subr.bf16.mxu1 %v5095_v23 }
 0x60d   : > { %5098 = vmatpush3.bf16.msra.mxu1 %v5095_v23 }
 0x60e   : > { %v5099_v28 = vpack.c.bf16 %v2493_v25, %v2488_v27  ;;  %v4032_v25 = vld [vmem:[%s6113_s4 + $0x68] sm:$0xff] }
 0x610   : > { %5100 = vmatprep.subr.bf16.mxu1 %v5099_v28 }
 0x611   : > { %5102 = vmatpush3.bf16.msra.mxu1 %v5099_v28 }
 0x67d   : > { %v1928_v29 = vpop.xlane.xlu1 %1927 }
 0x67e   : > { %v1948_v30 = vsub.f32 %v4669_v56, %v1928_v29  ;;  %v1925_v32 = vpop.xlane.xlu0 %1924 }
 0x67f   : > { %v1947_v34 = vsub.f32 %v1884_v57, %v1925_v32  ;;  %v5055_v32 = vpack.c.bf16 %v4032_v25, %v4031_v24 }
 0x680   : > { %v1957_v35 = vmul.f32 1.442695, %v1948_v30 }
 0x681   : > { %v1955_v36 = vmul.f32 1.442695, %v1947_v34  ;;  %v1934_v38 = vpop.xlane.xlu1 %1933 }
 0x682   : > { %5229 = vpow2.f32 %v1957_v35  ;;  %v1950_v39 = vsub.f32 %v4672_v61, %v1934_v38  ;;  %v1931_v41 = vpop.xlane.xlu0 %1930 }
 0x683   : > { %5231 = vpow2.f32 %v1955_v36  ;;  %v1949_v43 = vsub.f32 %v1894_v63, %v1931_v41 }
 0x684   : > { %v1961_v44 = vmul.f32 1.442695, %v1950_v39 }
 0x685   : > { %v1959_v45 = vmul.f32 1.442695, %v1949_v43  ;;  %v1940_v47 = vpop.xlane.xlu1 %1939 }
 0x686   : > { %5233 = vpow2.f32 %v1961_v44  ;;  %v1952_v48 = vsub.f32 %v4675_v62, %v1940_v47  ;;  %v1937_v50 = vpop.xlane.xlu0 %1936 }
 0x687   : > { %5235 = vpow2.f32 %v1959_v45  ;;  %v1951_v51 = vsub.f32 %v1904_v0, %v1937_v50 }
 0x688   : > { %v1965_v52 = vmul.f32 1.442695, %v1952_v48 }
 0x689   : > { %v1963_v55 = vmul.f32 1.442695, %v1951_v51  ;;  %v1946_v56 = vpop.xlane.xlu1 %1945  ;;  %v5821_v51 = vld [vmem:[%s6115_s6] sm:$0xf] }
 0x68a   : > { %5237 = vpow2.f32 %v1965_v52  ;;  %v1954_v57 = vsub.f32 %v5771_v4, %v1946_v56  ;;  %v1943_v58 = vpop.xlane.xlu0 %1942 }
 0x68b   : > { %5239 = vpow2.f32 %v1963_v55  ;;  %v1953_v60 = vsub.f32 %v5773_v5, %v1943_v58 }
 0x68c   : > { %v5230_v61 = vpop.eup %5229  ;;  %v1969_v63 = vmul.f32 1.442695, %v1954_v57 }
 0x68d   : > { %v5232_v37 = vpop.eup %5231  ;;  %v1967_v1 = vmul.f32 1.442695, %v1953_v60  ;;  %v1974_v59 = vsel %vm1091_vm4, %v5230_v61, 0.0 }
 0x68e   : > { %5241 = vpow2.f32 %v1969_v63  ;;  %1975 = vadd.xlane.f32.xlu1 %v1974_v59  ;;  %v1971_v62 = vsel %vm1091_vm4, %v5232_v37, 0.0 }
 0x68f   : > { %5243 = vpow2.f32 %v1967_v1  ;;  %1972 = vadd.xlane.f32.xlu0 %v1971_v62 }
 0x690   : > { %v5234_v0 = vpop.eup %5233 }
 0x691   : > { %v5236_v3 = vpop.eup %5235  ;;  %v1980_v4 = vsel %vm1091_vm4, %v5234_v0, 0.0 }
 0x692   : > { %1981 = vadd.xlane.f32.xlu1 %v1980_v4  ;;  %v1977_v8 = vsel %vm1091_vm4, %v5236_v3, 0.0 }
 0x693   : > { %1978 = vadd.xlane.f32.xlu0 %v1977_v8 }
 0x694   : > { %v5238_v5 = vpop.eup %5237 }
 0x695   : > { %v5240_v2 = vpop.eup %5239  ;;  %v1986_v7 = vsel %vm1091_vm4, %v5238_v5, 0.0 }
 0x696   : > { %1987 = vadd.xlane.f32.xlu1 %v1986_v7  ;;  %v1983_v10 = vsel %vm1091_vm4, %v5240_v2, 0.0 }
 0x697   : > { %1984 = vadd.xlane.f32.xlu0 %v1983_v10 }
 0x698   : > { %v5242_v13 = vpop.eup %5241 }
 0x699   : > { %v5244_v14 = vpop.eup %5243  ;;  %v1992_v6 = vsel %vm1091_vm4, %v5242_v13, 0.0 }
 0x69a   : > { %1993 = vadd.xlane.f32.xlu1 %v1992_v6  ;;  %v1989_v12 = vsel %vm1091_vm4, %v5244_v14, 0.0 }
 0x69b   : > { %1990 = vadd.xlane.f32.xlu0 %v1989_v12 }
 0x71b   : > { %v1976_v11 = vpop.xlane.xlu1 %1975 }
 0x71c   : > { %5245 = vrcp.f32 %v1976_v11  ;;  %v1973_v18 = vpop.xlane.xlu0 %1972 }
 0x71d   : > { %5247 = vrcp.f32 %v1973_v18 }
 0x71f   : > { %v1982_v19 = vpop.xlane.xlu1 %1981 }
 0x720   : > { %5249 = vrcp.f32 %v1982_v19  ;;  %v1979_v20 = vpop.xlane.xlu0 %1978 }
 0x721   : > { %5251 = vrcp.f32 %v1979_v20 }
 0x723   : > { %v1988_v21 = vpop.xlane.xlu1 %1987 }
 0x724   : > { %5253 = vrcp.f32 %v1988_v21  ;;  %v1985_v22 = vpop.xlane.xlu0 %1984 }
 0x725   : > { %5255 = vrcp.f32 %v1985_v22 }
 0x726   : > { %v5246_v23 = vpop.eup %5245 }
 0x727   : > { %v5248_v26 = vpop.eup %5247  ;;  %v1994_v27 = vpop.xlane.xlu1 %1993  ;;  %v2004_v30 = vmul.f32 %v5246_v23, %v5230_v61 }
 0x728   : > { %5257 = vrcp.f32 %v1994_v27  ;;  %v1991_v28 = vpop.xlane.xlu0 %1990  ;;  %v2003_v29 = vmul.f32 %v5248_v26, %v5232_v37  ;;  %v4022_v37 = vld [vmem:[%s6114_s5 + $0x2] ss:$0 sm:$0xff] }
 0x729   : > { %5259 = vrcp.f32 %v1991_v28 }
 0x72a   : > { %v5250_v34 = vpop.eup %5249  ;;  %4695 = vmatprep.mubr.msk.f32.mxu0 %vm1091_vm4, %v2003_v29 }
 0x72b   : > { %v5252_v35 = vpop.eup %5251  ;;  %4696 = vmatmul.mubr.msk.f32.vlgmr.msra.gmra.mrb[36].mxu0 %vm1091_vm4, %v2004_v30  ;;  %v2006_v38 = vmul.f32 %v5250_v34, %v5234_v0 }
 0x72c   : > { %5054 = vmatpush3.bf16.msra.mxu0 %v5051_v17  ;;  %v2005_v36 = vmul.f32 %v5252_v35, %v5236_v3 }
 0x72d   : > { %5056 = vmatprep.subr.bf16.mxu0 %v5055_v32 }
 0x72e   : > { %v5254_v39 = vpop.eup %5253  ;;  %4698 = vmatprep.mubr.msk.f32.mxu0 %vm1091_vm4, %v2005_v36 }
 0x72f   : > { %v5256_v41 = vpop.eup %5255  ;;  %4699 = vmatmul.mubr.msk.f32.gmra.mrb[38].mxu0 %vm1091_vm4, %v2006_v38  ;;  %v2008_v44 = vmul.f32 %v5254_v39, %v5238_v5  ;;  %v4112_v39 = vld [vmem:[%s6113_s4 + $0xb0] sm:$0xff] }
 0x730   : > { %v2007_v43 = vmul.f32 %v5256_v41, %v5240_v2  ;;  %v4113_v41 = vld [vmem:[%s6113_s4 + $0xb8] sm:$0xff] }
 0x732   : > { %v5258_v45 = vpop.eup %5257  ;;  %4701 = vmatprep.mubr.msk.f32.mxu0 %vm1091_vm4, %v2007_v43  ;;  %v5111_v43 = vpack.c.bf16 %v4113_v41, %v4112_v39 }
 0x733   : > { %v5260_v47 = vpop.eup %5259  ;;  %4702 = vmatmul.mubr.msk.f32.gmra.mrb[40].mxu0 %vm1091_vm4, %v2008_v44  ;;  %v2010_v50 = vmul.f32 %v5258_v45, %v5242_v13 }
 0x734   : > { %v2009_v48 = vmul.f32 %v5260_v47, %v5244_v14 }
 0x736   : > { %4704 = vmatprep.mubr.msk.f32.mxu0 %vm1091_vm4, %v2009_v48 }
 0x737   : > { %4705 = vmatmul.mubr.msk.f32.gmra.mrb[42].mxu0 %vm1091_vm4, %v2010_v50 }
 0x738   : > { %4711 = vmatprep.mubr.msk.f32.mxu0 %vm289_vm0, %v5426_v31 }
 0x73b   : > { %4712 = vmatmul.mubr.msk.f32.vlgmr.msra.gmra.mrb[44].mxu0 %vm289_vm0, %v5428_v33 }
 0x73c   : > { %5058 = vmatpush3.bf16.msra.mxu0 %v5055_v32  ;;  %4714 = vmatprep.mubr.msk.f32.mxu0 %vm289_vm0, %v5439_v40 }
 0x73d   : > { %4755 = vmatprep.subr.msk.mxu0 %vm853_vm1, %v5821_v51 }
 0x73f   : > { %4715 = vmatmul.mubr.msk.f32.gmra.mrb[46].mxu0 %vm289_vm0, %v5441_v42 }
 0x740   : > { %4717 = vmatprep.mubr.msk.f32.mxu0 %vm289_vm0, %v5451_v49 }
 0x743   : > { %4718 = vmatmul.mubr.msk.f32.gmra.mrb[48].mxu0 %vm289_vm0, %v5447_v46 }
 0x744   : > { %4720 = vmatprep.mubr.msk.f32.mxu0 %vm289_vm0, %v5463_v54 }
 0x747   : > { %4721 = vmatmul.mubr.msk.f32.gmra.mrb[50].mxu0 %vm289_vm0, %v5457_v53 }
 0x748   : > { %4727 = vmatprep.mubr.msk.f32.mxu0 %vm289_vm0, %v5426_v31 }
 0x74b   : > { %4728 = vmatmul.mubr.msk.f32.vlgmr.msra.gmra.mrb[52].mxu0 %vm289_vm0, %v5428_v33 }
 0x74c   : > { %4730 = vmatprep.mubr.msk.f32.mxu0 %vm289_vm0, %v5439_v40  ;;  %4756 = vmatpush3.msk.msra.mxu0 %vm853_vm1, %v5821_v51 }
 0x74f   : > { %4731 = vmatmul.mubr.msk.f32.gmra.mrb[54].mxu0 %vm289_vm0, %v5441_v42 }
 0x750   : > { %4733 = vmatprep.mubr.msk.f32.mxu0 %vm289_vm0, %v5451_v49 }
 0x753   : > { %4734 = vmatmul.mubr.msk.f32.gmra.mrb[56].mxu0 %vm289_vm0, %v5447_v46 }
 0x754   : > { %4736 = vmatprep.mubr.msk.f32.mxu0 %vm289_vm0, %v5463_v54 }
 0x757   : > { %4737 = vmatmul.mubr.msk.f32.gmra.mrb[58].mxu0 %vm289_vm0, %v5457_v53 }
 0x7fe   : > { %v4697_v52 = vpop.f32.mrb[36].mxu0 }
 0x7ff   : > { %2141 = vst.msk [vmem:[%s5687_s10 + $0x48] sm:$0xff] %vm828_vm2, %v4697_v52  ;;  %v2101_v55 = vpop.f32.mrb[37].mxu0 }
 0x800   : > { %2140 = vst.msk [vmem:[%s5687_s10 + $0x40] sm:$0xff] %vm828_vm2, %v2101_v55 }
 0x802   : > { %v4700_v56 = vpop.f32.mrb[38].mxu0 }
 0x803   : > { %2143 = vst.msk [vmem:[%s5687_s10 + $0x58] sm:$0xff] %vm828_vm2, %v4700_v56  ;;  %v2111_v57 = vpop.f32.mrb[39].mxu0 }
 0x804   : > { %2142 = vst.msk [vmem:[%s5687_s10 + $0x50] sm:$0xff] %vm828_vm2, %v2111_v57 }
 0x806   : > { %v4703_v58 = vpop.f32.mrb[40].mxu0 }
 0x807   : > { %2145 = vst.msk [vmem:[%s5687_s10 + $0x68] sm:$0xff] %vm828_vm2, %v4703_v58  ;;  %v2121_v60 = vpop.f32.mrb[41].mxu0 }
 0x808   : > { %2144 = vst.msk [vmem:[%s5687_s10 + $0x60] sm:$0xff] %vm828_vm2, %v2121_v60 }
 0x80a   : > { %v4706_v61 = vpop.f32.mrb[42].mxu0 }
 0x80b   : > { %2147 = vst.msk [vmem:[%s5687_s10 + $0x78] sm:$0xff] %vm828_vm2, %v4706_v61  ;;  %v2131_v63 = vpop.f32.mrb[43].mxu0 }
 0x80c   : > { %2146 = vst.msk [vmem:[%s5687_s10 + $0x70] sm:$0xff] %vm828_vm2, %v2131_v63 }
 0x80e   : > { %v4713_v1 = vpop.f32.mrb[44].mxu0 }
 0x80f   : > { %v2225_v59 = vpop.f32.mrb[45].mxu0  ;;  %v2231_v0 = vadd.f32 %v4713_v1, %v4022_v37 }
 0x810   : > { %v2226_v62 = vadd.f32 %v4022_v37, %v2225_v59 }
 0x812   : > { %v4716_v3 = vpop.f32.mrb[46].mxu0  ;;  %4757 = vmatprep.mubr.msk.f32.mxu0 %vm828_vm2, %v2226_v62 }
 0x813   : > { %v2235_v4 = vpop.f32.mrb[47].mxu0  ;;  %4758 = vmatmul.mubr.msk.f32.vlgmr.msra.gmra.mrb[60].mxu0 %vm828_vm2, %v2231_v0  ;;  %v2241_v5 = vadd.f32 %v4716_v3, %v4022_v37 }
 0x814   : > { %v2236_v8 = vadd.f32 %v4022_v37, %v2235_v4 }
 0x816   : > { %v4719_v2 = vpop.f32.mrb[48].mxu0  ;;  %4760 = vmatprep.mubr.msk.f32.mxu0 %vm828_vm2, %v2236_v8 }
 0x817   : > { %v2245_v7 = vpop.f32.mrb[49].mxu0  ;;  %4761 = vmatmul.mubr.msk.f32.gmra.mrb[62].mxu0 %vm828_vm2, %v2241_v5  ;;  %v2251_v13 = vadd.f32 %v4719_v2, %v4022_v37 }
 0x818   : > { %v2246_v10 = vadd.f32 %v4022_v37, %v2245_v7 }
 0x81a   : > { %v4722_v14 = vpop.f32.mrb[50].mxu0  ;;  %4763 = vmatprep.mubr.msk.f32.mxu0 %vm828_vm2, %v2246_v10 }
 0x81b   : > { %v2255_v6 = vpop.f32.mrb[51].mxu0  ;;  %4764 = vmatmul.mubr.msk.f32.gmra.mrb[64].mxu0 %vm828_vm2, %v2251_v13  ;;  %v2261_v16 = vadd.f32 %v4722_v14, %v4022_v37 }
 0x81c   : > { %v2256_v12 = vadd.f32 %v4022_v37, %v2255_v6 }
 0x81e   : > { %v4729_v17 = vpop.f32.mrb[52].mxu0  ;;  %4766 = vmatprep.mubr.msk.f32.mxu0 %vm828_vm2, %v2256_v12 }
 0x81f   : > { %v2347_v11 = vadd.f32 %v4729_v17, %v4034_v15  ;;  %v2341_v18 = vpop.f32.mrb[53].mxu0  ;;  %4767 = vmatmul.mubr.msk.f32.gmra.mrb[66].mxu0 %vm828_vm2, %v2261_v16 }
 0x820   : > { %v2342_v19 = vadd.f32 %v4034_v15, %v2341_v18  ;;  %4785 = vmatprep.mubr.msk.f32.mxu0 %vm828_vm2, %v2226_v62  ;;  %v4115_v62 = vld [vmem:[%s6114_s5 + $0xb] ss:$0 sm:$0xff] }
 0x822   : > { %v5063_v20 = vpack.c.bf16 %v2347_v11, %v2342_v19  ;;  %v4732_v21 = vpop.f32.mrb[54].mxu0 }
 0x823   : > { %v2357_v22 = vadd.f32 %v4732_v21, %v4034_v15  ;;  %v2351_v23 = vpop.f32.mrb[55].mxu0 }
 0x824   : > { %v2352_v24 = vadd.f32 %v4034_v15, %v2351_v23  ;;  %5065 = vmatprep.subr.msk.bf16.mxu0 %vm5524_vm3, %v5063_v20 }
 0x825   : > { %5068 = vmatpush3.bf16.xpose.msk.msra.mxu0 %vm5524_vm3, %v5063_v20 }
 0x826   : > { %v5069_v25 = vpack.c.bf16 %v2357_v22, %v2352_v24  ;;  %v4735_v26 = vpop.f32.mrb[56].mxu0 }
 0x827   : > { %v2367_v27 = vadd.f32 %v4735_v26, %v4034_v15  ;;  %v2361_v28 = vpop.f32.mrb[57].mxu0 }
 0x828   : > { %v2362_v29 = vadd.f32 %v4034_v15, %v2361_v28  ;;  %5071 = vmatprep.subr.msk.bf16.mxu0 %vm5524_vm3, %v5069_v25 }
 0x82a   : > { %v5075_v30 = vpack.c.bf16 %v2367_v27, %v2362_v29  ;;  %v4738_v32 = vpop.f32.mrb[58].mxu0 }
 0x82b   : > { %v2377_v34 = vadd.f32 %v4738_v32, %v4034_v15  ;;  %v2371_v35 = vpop.f32.mrb[59].mxu0 }
 0x82c   : > { %v2372_v36 = vadd.f32 %v4034_v15, %v2371_v35 }
 0x82d   : > { %5074 = vmatpush3.bf16.xpose.msk.msra.mxu0 %vm5524_vm3, %v5069_v25 }
 0x82e   : > { %v5081_v38 = vpack.c.bf16 %v2377_v34, %v2372_v36  ;;  %5077 = vmatprep.subr.msk.bf16.mxu0 %vm5524_vm3, %v5075_v30 }
 0x835   : > { %5080 = vmatpush3.bf16.xpose.msk.msra.mxu0 %vm5524_vm3, %v5075_v30 }
 0x836   : > { %5083 = vmatprep.subr.msk.bf16.mxu0 %vm5524_vm3, %v5081_v38 }
 0x83d   : > { %5086 = vmatpush3.bf16.xpose.msk.msra.mxu0 %vm5524_vm3, %v5081_v38 }
 0x83e   : > { %5112 = vmatprep.subr.bf16.mxu0 %v5111_v43 }
 0x844   : > { %4786 = vmatmul.mubr.msk.f32.vlgmr.msra.gmra.mrb[60].mxu0 %vm828_vm2, %v2231_v0 }
 0x845   : > { %4788 = vmatprep.mubr.msk.f32.mxu0 %vm828_vm2, %v2236_v8  ;;  %5114 = vmatpush3.bf16.msra.mxu0 %v5111_v43 }
 0x848   : > { %4789 = vmatmul.mubr.msk.f32.gmra.mrb[62].mxu0 %vm828_vm2, %v2241_v5 }
 0x849   : > { %4791 = vmatprep.mubr.msk.f32.mxu0 %vm828_vm2, %v2246_v10 }
 0x84c   : > { %4792 = vmatmul.mubr.msk.f32.gmra.mrb[64].mxu0 %vm828_vm2, %v2251_v13 }
 0x84d   : > { %4794 = vmatprep.mubr.msk.f32.mxu0 %vm828_vm2, %v2256_v12 }
 0x850   : > { %4795 = vmatmul.mubr.msk.f32.gmra.mrb[66].mxu0 %vm828_vm2, %v2261_v16 }
 0x851   : > { %4861 = vmatprep.mubr.msk.f32.mxu0 %vm289_vm0, %v5426_v31 }
 0x854   : > { %4862 = vmatmul.mubr.msk.f32.vlgmr.msra.gmra.mrb[68].mxu0 %vm289_vm0, %v5428_v33 }
 0x855   : > { %4864 = vmatprep.mubr.msk.f32.mxu0 %vm289_vm0, %v5439_v40 }
 0x858   : > { %4865 = vmatmul.mubr.msk.f32.gmra.mrb[70].mxu0 %vm289_vm0, %v5441_v42 }
 0x859   : > { %4867 = vmatprep.mubr.msk.f32.mxu0 %vm289_vm0, %v5451_v49 }
 0x85c   : > { %4868 = vmatmul.mubr.msk.f32.gmra.mrb[72].mxu0 %vm289_vm0, %v5447_v46 }
 0x85d   : > { %4870 = vmatprep.mubr.msk.f32.mxu0 %vm289_vm0, %v5463_v54 }
 0x860   : > { %4871 = vmatmul.mubr.msk.f32.gmra.mrb[74].mxu0 %vm289_vm0, %v5457_v53 }
 0x917   : > { %v4787_v44 = vpop.f32.mrb[60].mxu0 }
 0x918   : > { %v2715_v45 = vpop.f32.mrb[61].mxu0  ;;  %v2757_v47 = vsel %vm1091_vm4, %v4787_v44, -inf }
 0x919   : > { %2758 = vmax.xlane.f32.xlu1 %v2757_v47  ;;  %v2754_v48 = vsel %vm1091_vm4, %v2715_v45, -inf }
 0x91a   : > { %2755 = vmax.xlane.f32.xlu0 %v2754_v48 }
 0x91b   : > { %v4790_v50 = vpop.f32.mrb[62].mxu0 }
 0x91c   : > { %v2725_v52 = vpop.f32.mrb[63].mxu0  ;;  %v2763_v55 = vsel %vm1091_vm4, %v4790_v50, -inf }
 0x91d   : > { %2764 = vmax.xlane.f32.xlu1 %v2763_v55  ;;  %v2760_v56 = vsel %vm1091_vm4, %v2725_v52, -inf }
 0x91e   : > { %2761 = vmax.xlane.f32.xlu0 %v2760_v56 }
 0x91f   : > { %v4793_v57 = vpop.f32.mrb[64].mxu0 }
 0x920   : > { %v2735_v58 = vpop.f32.mrb[65].mxu0  ;;  %v2769_v60 = vsel %vm1091_vm4, %v4793_v57, -inf }
 0x921   : > { %2770 = vmax.xlane.f32.xlu1 %v2769_v60  ;;  %v2766_v61 = vsel %vm1091_vm4, %v2735_v58, -inf }
 0x922   : > { %2767 = vmax.xlane.f32.xlu0 %v2766_v61 }
 0x923   : > { %v5935_v63 = vpop.f32.mrb[66].mxu0 }
 0x924   : > { %v5937_v37 = vpop.f32.mrb[67].mxu0  ;;  %v2775_v1 = vsel %vm1091_vm4, %v5935_v63, -inf }
 0x925   : > { %2776 = vmax.xlane.f32.xlu1 %v2775_v1  ;;  %v2772_v59 = vsel %vm1091_vm4, %v5937_v37, -inf }
 0x926   : > { %2773 = vmax.xlane.f32.xlu0 %v2772_v59 }
 0x927   : > { %v4863_v0 = vpop.f32.mrb[68].mxu0 }
 0x928   : > { %v3294_v3 = vadd.f32 %v4863_v0, %v4115_v62  ;;  %v3288_v4 = vpop.f32.mrb[69].mxu0 }
 0x929   : > { %v3289_v8 = vadd.f32 %v4115_v62, %v3288_v4 }
 0x92b   : > { %v5139_v5 = vpack.c.bf16 %v3294_v3, %v3289_v8  ;;  %v4866_v2 = vpop.f32.mrb[70].mxu0 }
 0x92c   : > { %v3304_v7 = vadd.f32 %v4866_v2, %v4115_v62  ;;  %v3298_v10 = vpop.f32.mrb[71].mxu0 }
 0x92d   : > { %v3299_v13 = vadd.f32 %v4115_v62, %v3298_v10  ;;  %5140 = vmatprep.subr.bf16.mxu0 %v5139_v5  ;;  %v4089_v10 = vld [vmem:[%s6113_s4 + $0x38] sm:$0xff] }
 0x92e   : > { %5142 = vmatpush3.bf16.msra.mxu0 %v5139_v5 }
 0x92f   : > { %v5143_v14 = vpack.c.bf16 %v3304_v7, %v3299_v13  ;;  %v4869_v6 = vpop.f32.mrb[72].mxu0  ;;  %v4088_v7 = vld [vmem:[%s6113_s4 + $0x30] sm:$0xff] }
 0x930   : > { %v3314_v12 = vadd.f32 %v4869_v6, %v4115_v62  ;;  %v3308_v15 = vpop.f32.mrb[73].mxu0  ;;  %v5103_v13 = vpack.c.bf16 %v4089_v10, %v4088_v7 }
 0x931   : > { %v3309_v16 = vadd.f32 %v4115_v62, %v3308_v15  ;;  %5144 = vmatprep.subr.bf16.mxu0 %v5143_v14 }
 0x932   : > { %5146 = vmatpush3.bf16.msra.mxu0 %v5143_v14  ;;  %5104 = vmatprep.subr.bf16.mxu1 %v5103_v13 }
 0x933   : > { %v5147_v17 = vpack.c.bf16 %v3314_v12, %v3309_v16  ;;  %v4872_v11 = vpop.f32.mrb[74].mxu0 }
 0x934   : > { %v3324_v18 = vadd.f32 %v4872_v11, %v4115_v62  ;;  %v3318_v19 = vpop.f32.mrb[75].mxu0 }
 0x935   : > { %v3319_v20 = vadd.f32 %v4115_v62, %v3318_v19  ;;  %5148 = vmatprep.subr.bf16.mxu0 %v5147_v17  ;;  %v4101_v19 = vld [vmem:[%s6113_s4 + $0x78] sm:$0xff] }
 0x936   : > { %5150 = vmatpush3.bf16.msra.mxu0 %v5147_v17 }
 0x937   : > { %v5151_v21 = vpack.c.bf16 %v3324_v18, %v3319_v20  ;;  %v4100_v18 = vld [vmem:[%s6113_s4 + $0x70] sm:$0xff] }
 0x939   : > { %5152 = vmatprep.subr.bf16.mxu0 %v5151_v21 }
 0x93a   : > { %5154 = vmatpush3.bf16.msra.mxu0 %v5151_v21 }
 0x9a6   : > { %v2759_v22 = vpop.xlane.xlu1 %2758 }
 0x9a7   : > { %v2779_v23 = vsub.f32 %v4787_v44, %v2759_v22  ;;  %v2756_v24 = vpop.xlane.xlu0 %2755 }
 0x9a8   : > { %v2778_v25 = vsub.f32 %v2715_v45, %v2756_v24 }
 0x9a9   : > { %v2788_v26 = vmul.f32 1.442695, %v2779_v23 }
 0x9aa   : > { %v2786_v27 = vmul.f32 1.442695, %v2778_v25  ;;  %v2765_v28 = vpop.xlane.xlu1 %2764  ;;  %v5107_v25 = vpack.c.bf16 %v4101_v19, %v4100_v18 }
 0x9ab   : > { %5261 = vpow2.f32 %v2788_v26  ;;  %v2781_v29 = vsub.f32 %v4790_v50, %v2765_v28  ;;  %v2762_v30 = vpop.xlane.xlu0 %2761 }
 0x9ac   : > { %5263 = vpow2.f32 %v2786_v27  ;;  %v2780_v32 = vsub.f32 %v2725_v52, %v2762_v30 }
 0x9ad   : > { %v2792_v34 = vmul.f32 1.442695, %v2781_v29 }
 0x9ae   : > { %v2790_v35 = vmul.f32 1.442695, %v2780_v32  ;;  %v2771_v36 = vpop.xlane.xlu1 %2770 }
 0x9af   : > { %5265 = vpow2.f32 %v2792_v34  ;;  %v2783_v38 = vsub.f32 %v4793_v57, %v2771_v36  ;;  %v2768_v39 = vpop.xlane.xlu0 %2767 }
 0x9b0   : > { %5267 = vpow2.f32 %v2790_v35  ;;  %v2782_v41 = vsub.f32 %v2735_v58, %v2768_v39 }
 0x9b1   : > { %v2796_v43 = vmul.f32 1.442695, %v2783_v38 }
 0x9b2   : > { %v2794_v44 = vmul.f32 1.442695, %v2782_v41  ;;  %v2777_v47 = vpop.xlane.xlu1 %2776 }
 0x9b3   : > { %5269 = vpow2.f32 %v2796_v43  ;;  %v2785_v45 = vsub.f32 %v5935_v63, %v2777_v47  ;;  %v2774_v48 = vpop.xlane.xlu0 %2773 }
 0x9b4   : > { %5271 = vpow2.f32 %v2794_v44  ;;  %v2784_v50 = vsub.f32 %v5937_v37, %v2774_v48 }
 0x9b5   : > { %v5262_v55 = vpop.eup %5261  ;;  %v2800_v52 = vmul.f32 1.442695, %v2785_v45 }
 0x9b6   : > { %v5264_v56 = vpop.eup %5263  ;;  %v2798_v60 = vmul.f32 1.442695, %v2784_v50  ;;  %v2805_v61 = vsel %vm1091_vm4, %v5262_v55, 0.0 }
 0x9b7   : > { %5273 = vpow2.f32 %v2800_v52  ;;  %2806 = vadd.xlane.f32.xlu1 %v2805_v61  ;;  %v2802_v57 = vsel %vm1091_vm4, %v5264_v56, 0.0 }
 0x9b8   : > { %5275 = vpow2.f32 %v2798_v60  ;;  %2803 = vadd.xlane.f32.xlu0 %v2802_v57 }
 0x9b9   : > { %v5266_v58 = vpop.eup %5265 }
 0x9ba   : > { %v5268_v1 = vpop.eup %5267  ;;  %v2811_v63 = vsel %vm1091_vm4, %v5266_v58, 0.0 }
 0x9bb   : > { %2812 = vadd.xlane.f32.xlu1 %v2811_v63  ;;  %v2808_v59 = vsel %vm1091_vm4, %v5268_v1, 0.0 }
 0x9bc   : > { %2809 = vadd.xlane.f32.xlu0 %v2808_v59  ;;  %v4103_v59 = vld [vmem:[%s6114_s5 + $0x7] ss:$0 sm:$0xff] }
 0x9bd   : > { %v5270_v37 = vpop.eup %5269 }
 0x9be   : > { %v5272_v62 = vpop.eup %5271  ;;  %v2817_v0 = vsel %vm1091_vm4, %v5270_v37, 0.0 }
 0x9bf   : > { %2818 = vadd.xlane.f32.xlu1 %v2817_v0  ;;  %v2814_v3 = vsel %vm1091_vm4, %v5272_v62, 0.0 }
 0x9c0   : > { %2815 = vadd.xlane.f32.xlu0 %v2814_v3 }
 0x9c1   : > { %v5274_v4 = vpop.eup %5273 }
 0x9c2   : > { %v5276_v8 = vpop.eup %5275  ;;  %v2823_v5 = vsel %vm1091_vm4, %v5274_v4, 0.0 }
 0x9c3   : > { %2824 = vadd.xlane.f32.xlu1 %v2823_v5  ;;  %v2820_v2 = vsel %vm1091_vm4, %v5276_v8, 0.0 }
 0x9c4   : > { %2821 = vadd.xlane.f32.xlu0 %v2820_v2 }
 0xa44   : > { %v2807_v14 = vpop.xlane.xlu1 %2806 }
 0xa45   : > { %5277 = vrcp.f32 %v2807_v14  ;;  %v2804_v6 = vpop.xlane.xlu0 %2803 }
 0xa46   : > { %5279 = vrcp.f32 %v2804_v6 }
 0xa48   : > { %v2813_v12 = vpop.xlane.xlu1 %2812 }
 0xa49   : > { %5281 = vrcp.f32 %v2813_v12  ;;  %v2810_v15 = vpop.xlane.xlu0 %2809 }
 0xa4a   : > { %5283 = vrcp.f32 %v2810_v15 }
 0xa4c   : > { %v2819_v16 = vpop.xlane.xlu1 %2818 }
 0xa4d   : > { %5285 = vrcp.f32 %v2819_v16  ;;  %v2816_v17 = vpop.xlane.xlu0 %2815 }
 0xa4e   : > { %5287 = vrcp.f32 %v2816_v17 }
 0xa4f   : > { %v5278_v11 = vpop.eup %5277 }
 0xa50   : > { %v5280_v20 = vpop.eup %5279  ;;  %v2825_v21 = vpop.xlane.xlu1 %2824  ;;  %v2835_v24 = vmul.f32 %v5278_v11, %v5262_v55 }
 0xa51   : > { %5289 = vrcp.f32 %v2825_v21  ;;  %v2822_v22 = vpop.xlane.xlu0 %2821  ;;  %v2834_v23 = vmul.f32 %v5280_v20, %v5264_v56 }
 0xa52   : > { %5291 = vrcp.f32 %v2822_v22 }
 0xa53   : > { %v5282_v26 = vpop.eup %5281  ;;  %4813 = vmatprep.mubr.msk.f32.mxu1 %vm1091_vm4, %v2834_v23 }
 0xa54   : > { %v5284_v27 = vpop.eup %5283  ;;  %4814 = vmatmul.mubr.msk.f32.vlgmr.msra.gmra.mrb[52].mxu1 %vm1091_vm4, %v2835_v24  ;;  %v2837_v29 = vmul.f32 %v5282_v26, %v5266_v58 }
 0xa55   : > { %5106 = vmatpush3.bf16.msra.mxu1 %v5103_v13  ;;  %v2836_v28 = vmul.f32 %v5284_v27, %v5268_v1 }
 0xa56   : > { %5108 = vmatprep.subr.bf16.mxu1 %v5107_v25 }
 0xa57   : > { %v5286_v30 = vpop.eup %5285  ;;  %4816 = vmatprep.mubr.msk.f32.mxu1 %vm1091_vm4, %v2836_v28 }
 0xa58   : > { %v5288_v32 = vpop.eup %5287  ;;  %4817 = vmatmul.mubr.msk.f32.gmra.mrb[54].mxu1 %vm1091_vm4, %v2837_v29  ;;  %v2839_v35 = vmul.f32 %v5286_v30, %v5270_v37 }
 0xa59   : > { %v2838_v34 = vmul.f32 %v5288_v32, %v5272_v62 }
 0xa5b   : > { %v5290_v36 = vpop.eup %5289  ;;  %4819 = vmatprep.mubr.msk.f32.mxu1 %vm1091_vm4, %v2838_v34 }
 0xa5c   : > { %v5292_v38 = vpop.eup %5291  ;;  %4820 = vmatmul.mubr.msk.f32.gmra.mrb[56].mxu1 %vm1091_vm4, %v2839_v35  ;;  %v2841_v41 = vmul.f32 %v5290_v36, %v5274_v4 }
 0xa5d   : > { %v2840_v39 = vmul.f32 %v5292_v38, %v5276_v8 }
 0xa5f   : > { %4822 = vmatprep.mubr.msk.f32.mxu1 %vm1091_vm4, %v2840_v39 }
 0xa60   : > { %4823 = vmatmul.mubr.msk.f32.gmra.mrb[58].mxu1 %vm1091_vm4, %v2841_v41 }
 0xa61   : > { %4829 = vmatprep.mubr.msk.f32.mxu1 %vm289_vm0, %v5426_v31 }
 0xa64   : > { %4830 = vmatmul.mubr.msk.f32.vlgmr.msra.gmra.mrb[60].mxu1 %vm289_vm0, %v5428_v33 }
 0xa65   : > { %5110 = vmatpush3.bf16.msra.mxu1 %v5107_v25  ;;  %4832 = vmatprep.mubr.msk.f32.mxu1 %vm289_vm0, %v5439_v40 }
 0xa66   : > { %4873 = vmatprep.subr.msk.mxu1 %vm853_vm1, %v5821_v51 }
 0xa68   : > { %4833 = vmatmul.mubr.msk.f32.gmra.mrb[62].mxu1 %vm289_vm0, %v5441_v42 }
 0xa69   : > { %4835 = vmatprep.mubr.msk.f32.mxu1 %vm289_vm0, %v5451_v49 }
 0xa6c   : > { %4836 = vmatmul.mubr.msk.f32.gmra.mrb[64].mxu1 %vm289_vm0, %v5447_v46 }
 0xa6d   : > { %4838 = vmatprep.mubr.msk.f32.mxu1 %vm289_vm0, %v5463_v54 }
 0xa70   : > { %4839 = vmatmul.mubr.msk.f32.gmra.mrb[66].mxu1 %vm289_vm0, %v5457_v53 }
 0xa71   : > { %4845 = vmatprep.mubr.msk.f32.mxu1 %vm289_vm0, %v5426_v31 }
 0xa74   : > { %4846 = vmatmul.mubr.msk.f32.vlgmr.msra.gmra.mrb[68].mxu1 %vm289_vm0, %v5428_v33 }
 0xa75   : > { %4848 = vmatprep.mubr.msk.f32.mxu1 %vm289_vm0, %v5439_v40  ;;  %4874 = vmatpush3.msk.msra.mxu1 %vm853_vm1, %v5821_v51  ;;  %v4091_v51 = vld [vmem:[%s6114_s5 + $0x3] ss:$0 sm:$0xff] }
 0xa78   : > { %4849 = vmatmul.mubr.msk.f32.gmra.mrb[70].mxu1 %vm289_vm0, %v5441_v42 }
 0xa79   : > { %4851 = vmatprep.mubr.msk.f32.mxu1 %vm289_vm0, %v5451_v49 }
 0xa7c   : > { %4852 = vmatmul.mubr.msk.f32.gmra.mrb[72].mxu1 %vm289_vm0, %v5447_v46 }
 0xa7d   : > { %4854 = vmatprep.mubr.msk.f32.mxu1 %vm289_vm0, %v5463_v54 }
 0xa80   : > { %4855 = vmatmul.mubr.msk.f32.gmra.mrb[74].mxu1 %vm289_vm0, %v5457_v53 }
 0xb27   : > { %v4815_v31 = vpop.f32.mrb[52].mxu1 }
 0xb28   : > { %2972 = vst.msk [vmem:[%s5687_s10 + $0x88] sm:$0xff] %vm828_vm2, %v4815_v31  ;;  %v2932_v33 = vpop.f32.mrb[53].mxu1 }
 0xb29   : > { %2971 = vst.msk [vmem:[%s5687_s10 + $0x80] sm:$0xff] %vm828_vm2, %v2932_v33 }
 0xb2b   : > { %v4818_v40 = vpop.f32.mrb[54].mxu1 }
 0xb2c   : > { %2974 = vst.msk [vmem:[%s5687_s10 + $0x98] sm:$0xff] %vm828_vm2, %v4818_v40  ;;  %v2942_v42 = vpop.f32.mrb[55].mxu1 }
 0xb2d   : > { %2973 = vst.msk [vmem:[%s5687_s10 + $0x90] sm:$0xff] %vm828_vm2, %v2942_v42 }
 0xb2f   : > { %v4821_v46 = vpop.f32.mrb[56].mxu1 }
 0xb30   : > { %2976 = vst.msk [vmem:[%s5687_s10 + $0xa8] sm:$0xff] %vm828_vm2, %v4821_v46  ;;  %v2952_v49 = vpop.f32.mrb[57].mxu1 }
 0xb31   : > { %2975 = vst.msk [vmem:[%s5687_s10 + $0xa0] sm:$0xff] %vm828_vm2, %v2952_v49 }
 0xb33   : > { %v4824_v53 = vpop.f32.mrb[58].mxu1 }
 0xb34   : > { %2978 = vst.msk [vmem:[%s5687_s10 + $0xb8] sm:$0xff] %vm828_vm2, %v4824_v53  ;;  %v2962_v54 = vpop.f32.mrb[59].mxu1 }
 0xb35   : > { %2977 = vst.msk [vmem:[%s5687_s10 + $0xb0] sm:$0xff] %vm828_vm2, %v2962_v54 }
 0xb37   : > { %v4831_v43 = vpop.f32.mrb[60].mxu1 }
 0xb38   : > { %v3056_v44 = vpop.f32.mrb[61].mxu1  ;;  %v3062_v45 = vadd.f32 %v4831_v43, %v4091_v51 }
 0xb39   : > { %v3057_v47 = vadd.f32 %v4091_v51, %v3056_v44 }
 0xb3b   : > { %v4834_v48 = vpop.f32.mrb[62].mxu1  ;;  %4875 = vmatprep.mubr.msk.f32.mxu1 %vm828_vm2, %v3057_v47 }
 0xb3c   : > { %v3066_v50 = vpop.f32.mrb[63].mxu1  ;;  %4876 = vmatmul.mubr.msk.f32.vlgmr.msra.gmra.mrb[76].mxu1 %vm828_vm2, %v3062_v45  ;;  %v3072_v52 = vadd.f32 %v4834_v48, %v4091_v51 }
 0xb3d   : > { %v3067_v55 = vadd.f32 %v4091_v51, %v3066_v50 }
 0xb3f   : > { %v4837_v56 = vpop.f32.mrb[64].mxu1  ;;  %4878 = vmatprep.mubr.msk.f32.mxu1 %vm828_vm2, %v3067_v55 }
 0xb40   : > { %v3076_v60 = vpop.f32.mrb[65].mxu1  ;;  %4879 = vmatmul.mubr.msk.f32.gmra.mrb[78].mxu1 %vm828_vm2, %v3072_v52  ;;  %v3082_v57 = vadd.f32 %v4837_v56, %v4091_v51 }
 0xb41   : > { %v3077_v61 = vadd.f32 %v4091_v51, %v3076_v60 }
 0xb43   : > { %v4840_v58 = vpop.f32.mrb[66].mxu1  ;;  %4881 = vmatprep.mubr.msk.f32.mxu1 %vm828_vm2, %v3077_v61 }
 0xb44   : > { %v3086_v1 = vpop.f32.mrb[67].mxu1  ;;  %4882 = vmatmul.mubr.msk.f32.gmra.mrb[80].mxu1 %vm828_vm2, %v3082_v57  ;;  %v3092_v37 = vadd.f32 %v4840_v58, %v4091_v51 }
 0xb45   : > { %v3087_v63 = vadd.f32 %v4091_v51, %v3086_v1 }
 0xb47   : > { %v4847_v62 = vpop.f32.mrb[68].mxu1  ;;  %4884 = vmatprep.mubr.msk.f32.mxu1 %vm828_vm2, %v3087_v63 }
 0xb48   : > { %v3178_v0 = vadd.f32 %v4847_v62, %v4103_v59  ;;  %v3172_v3 = vpop.f32.mrb[69].mxu1  ;;  %4885 = vmatmul.mubr.msk.f32.gmra.mrb[82].mxu1 %vm828_vm2, %v3092_v37 }
 0xb49   : > { %v3173_v4 = vadd.f32 %v4103_v59, %v3172_v3  ;;  %4903 = vmatprep.mubr.msk.f32.mxu1 %vm828_vm2, %v3057_v47 }
 0xb4b   : > { %v5115_v8 = vpack.c.bf16 %v3178_v0, %v3173_v4  ;;  %v4850_v5 = vpop.f32.mrb[70].mxu1 }
 0xb4c   : > { %v3188_v2 = vadd.f32 %v4850_v5, %v4103_v59  ;;  %v3182_v7 = vpop.f32.mrb[71].mxu1 }
 0xb4d   : > { %v3183_v10 = vadd.f32 %v4103_v59, %v3182_v7  ;;  %5117 = vmatprep.subr.msk.bf16.mxu1 %vm5524_vm3, %v5115_v8 }
 0xb4e   : > { %5120 = vmatpush3.bf16.xpose.msk.msra.mxu1 %vm5524_vm3, %v5115_v8 }
 0xb4f   : > { %v5121_v13 = vpack.c.bf16 %v3188_v2, %v3183_v10  ;;  %v4853_v14 = vpop.f32.mrb[72].mxu1 }
 0xb50   : > { %v3198_v6 = vadd.f32 %v4853_v14, %v4103_v59  ;;  %v3192_v12 = vpop.f32.mrb[73].mxu1 }
 0xb51   : > { %v3193_v15 = vadd.f32 %v4103_v59, %v3192_v12  ;;  %5123 = vmatprep.subr.msk.bf16.mxu1 %vm5524_vm3, %v5121_v13 }
 0xb53   : > { %v5127_v16 = vpack.c.bf16 %v3198_v6, %v3193_v15  ;;  %v4856_v17 = vpop.f32.mrb[74].mxu1 }
 0xb54   : > { %v3208_v11 = vadd.f32 %v4856_v17, %v4103_v59  ;;  %v3202_v18 = vpop.f32.mrb[75].mxu1 }
 0xb55   : > { %v3203_v19 = vadd.f32 %v4103_v59, %v3202_v18 }
 0xb56   : > { %5126 = vmatpush3.bf16.xpose.msk.msra.mxu1 %vm5524_vm3, %v5121_v13 }
 0xb57   : > { %v5133_v20 = vpack.c.bf16 %v3208_v11, %v3203_v19  ;;  %5129 = vmatprep.subr.msk.bf16.mxu1 %vm5524_vm3, %v5127_v16 }
 0xb5e   : > { %5132 = vmatpush3.bf16.xpose.msk.msra.mxu1 %vm5524_vm3, %v5127_v16 }
 0xb5f   : > { %5135 = vmatprep.subr.msk.bf16.mxu1 %vm5524_vm3, %v5133_v20 }
 0xb66   : > { %5138 = vmatpush3.bf16.xpose.msk.msra.mxu1 %vm5524_vm3, %v5133_v20 }
 0xb6d   : > { %4904 = vmatmul.mubr.msk.f32.vlgmr.msra.gmra.mrb[76].mxu1 %vm828_vm2, %v3062_v45 }
 0xb6e   : > { %4906 = vmatprep.mubr.msk.f32.mxu1 %vm828_vm2, %v3067_v55 }
 0xb71   : > { %4907 = vmatmul.mubr.msk.f32.gmra.mrb[78].mxu1 %vm828_vm2, %v3072_v52 }
 0xb72   : > { %4909 = vmatprep.mubr.msk.f32.mxu1 %vm828_vm2, %v3077_v61 }
 0xb75   : > { %4910 = vmatmul.mubr.msk.f32.gmra.mrb[80].mxu1 %vm828_vm2, %v3082_v57 }
 0xb76   : > { %4912 = vmatprep.mubr.msk.f32.mxu1 %vm828_vm2, %v3087_v63 }
 0xb79   : > { %4913 = vmatmul.mubr.msk.f32.gmra.mrb[82].mxu1 %vm828_vm2, %v3092_v37 }
 0xc40   : > { %v4905_v21 = vpop.f32.mrb[76].mxu1 }
 0xc41   : > { %v3546_v22 = vpop.f32.mrb[77].mxu1  ;;  %v3588_v23 = vsel %vm1091_vm4, %v4905_v21, -inf }
 0xc42   : > { %3589 = vmax.xlane.f32.xlu1 %v3588_v23  ;;  %v3585_v9 = vsel %vm1091_vm4, %v3546_v22, -inf }
 0xc43   : > { %3586 = vmax.xlane.f32.xlu0 %v3585_v9 }
 0xc44   : > { %v4908_v24 = vpop.f32.mrb[78].mxu1 }
 0xc45   : > { %v3556_v25 = vpop.f32.mrb[79].mxu1  ;;  %v3594_v26 = vsel %vm1091_vm4, %v4908_v24, -inf }
 0xc46   : > { %3595 = vmax.xlane.f32.xlu1 %v3594_v26  ;;  %v3591_v27 = vsel %vm1091_vm4, %v3556_v25, -inf }
 0xc47   : > { %3592 = vmax.xlane.f32.xlu0 %v3591_v27 }
 0xc48   : > { %v4911_v28 = vpop.f32.mrb[80].mxu1 }
 0xc49   : > { %v3566_v29 = vpop.f32.mrb[81].mxu1  ;;  %v3600_v30 = vsel %vm1091_vm4, %v4911_v28, -inf }
 0xc4a   : > { %3601 = vmax.xlane.f32.xlu1 %v3600_v30  ;;  %v3597_v32 = vsel %vm1091_vm4, %v3566_v29, -inf }
 0xc4b   : > { %3598 = vmax.xlane.f32.xlu0 %v3597_v32 }
 0xc4c   : > { %v4914_v34 = vpop.f32.mrb[82].mxu1 }
 0xc4d   : > { %v3576_v35 = vpop.f32.mrb[83].mxu1  ;;  %v3606_v36 = vsel %vm1091_vm4, %v4914_v34, -inf }
 0xc4e   : > { %3607 = vmax.xlane.f32.xlu1 %v3606_v36  ;;  %v3603_v38 = vsel %vm1091_vm4, %v3576_v35, -inf }
 0xc4f   : > { %3604 = vmax.xlane.f32.xlu0 %v3603_v38 }
 0xccf   : > { %v3590_v39 = vpop.xlane.xlu1 %3589 }
 0xcd0   : > { %v3610_v41 = vsub.f32 %v4905_v21, %v3590_v39  ;;  %v3587_v31 = vpop.xlane.xlu0 %3586 }
 0xcd1   : > { %v3609_v33 = vsub.f32 %v3546_v22, %v3587_v31 }
 0xcd2   : > { %v3619_v40 = vmul.f32 1.442695, %v3610_v41 }
 0xcd3   : > { %v3617_v42 = vmul.f32 1.442695, %v3609_v33  ;;  %v3596_v46 = vpop.xlane.xlu1 %3595 }
 0xcd4   : > { %5293 = vpow2.f32 %v3619_v40  ;;  %v3612_v49 = vsub.f32 %v4908_v24, %v3596_v46  ;;  %v3593_v53 = vpop.xlane.xlu0 %3592 }
 0xcd5   : > { %5295 = vpow2.f32 %v3617_v42  ;;  %v3611_v54 = vsub.f32 %v3556_v25, %v3593_v53 }
 0xcd6   : > { %v3623_v51 = vmul.f32 1.442695, %v3612_v49 }
 0xcd7   : > { %v3621_v43 = vmul.f32 1.442695, %v3611_v54  ;;  %v3602_v44 = vpop.xlane.xlu1 %3601 }
 0xcd8   : > { %5297 = vpow2.f32 %v3623_v51  ;;  %v3614_v47 = vsub.f32 %v4911_v28, %v3602_v44  ;;  %v3599_v45 = vpop.xlane.xlu0 %3598 }
 0xcd9   : > { %5299 = vpow2.f32 %v3621_v43  ;;  %v3613_v48 = vsub.f32 %v3566_v29, %v3599_v45 }
 0xcda   : > { %v3627_v50 = vmul.f32 1.442695, %v3614_v47 }
 0xcdb   : > { %v3625_v55 = vmul.f32 1.442695, %v3613_v48  ;;  %v3608_v52 = vpop.xlane.xlu1 %3607 }
 0xcdc   : > { %5301 = vpow2.f32 %v3627_v50  ;;  %v3616_v56 = vsub.f32 %v4914_v34, %v3608_v52  ;;  %v3605_v60 = vpop.xlane.xlu0 %3604 }
 0xcdd   : > { %5303 = vpow2.f32 %v3625_v55  ;;  %v3615_v61 = vsub.f32 %v3576_v35, %v3605_v60 }
 0xcde   : > { %v5294_v57 = vpop.eup %5293  ;;  %v3631_v58 = vmul.f32 1.442695, %v3616_v56 }
 0xcdf   : > { %v5296_v1 = vpop.eup %5295  ;;  %v3629_v63 = vmul.f32 1.442695, %v3615_v61  ;;  %v3636_v59 = vsel %vm1091_vm4, %v5294_v57, 0.0 }
 0xce0   : > { %5305 = vpow2.f32 %v3631_v58  ;;  %3637 = vadd.xlane.f32.xlu1 %v3636_v59  ;;  %v3633_v37 = vsel %vm1091_vm4, %v5296_v1, 0.0 }
 0xce1   : > { %5307 = vpow2.f32 %v3629_v63  ;;  %3634 = vadd.xlane.f32.xlu0 %v3633_v37 }
 0xce2   : > { %v5298_v62 = vpop.eup %5297 }
 0xce3   : > { %v5300_v0 = vpop.eup %5299  ;;  %v3642_v3 = vsel %vm1091_vm4, %v5298_v62, 0.0 }
 0xce4   : > { %3643 = vadd.xlane.f32.xlu1 %v3642_v3  ;;  %v3639_v4 = vsel %vm1091_vm4, %v5300_v0, 0.0 }
 0xce5   : > { %3640 = vadd.xlane.f32.xlu0 %v3639_v4 }
 0xce6   : > { %v5302_v8 = vpop.eup %5301 }
 0xce7   : > { %v5304_v5 = vpop.eup %5303  ;;  %v3648_v2 = vsel %vm1091_vm4, %v5302_v8, 0.0 }
 0xce8   : > { %3649 = vadd.xlane.f32.xlu1 %v3648_v2  ;;  %v3645_v7 = vsel %vm1091_vm4, %v5304_v5, 0.0 }
 0xce9   : > { %3646 = vadd.xlane.f32.xlu0 %v3645_v7 }
 0xcea   : > { %v5306_v10 = vpop.eup %5305 }
 0xceb   : > { %v5308_v13 = vpop.eup %5307  ;;  %v3654_v14 = vsel %vm1091_vm4, %v5306_v10, 0.0 }
 0xcec   : > { %3655 = vadd.xlane.f32.xlu1 %v3654_v14  ;;  %v3651_v6 = vsel %vm1091_vm4, %v5308_v13, 0.0 }
 0xced   : > { %3652 = vadd.xlane.f32.xlu0 %v3651_v6 }
 0xd6d   : > { %v3638_v12 = vpop.xlane.xlu1 %3637 }
 0xd6e   : > { %5309 = vrcp.f32 %v3638_v12  ;;  %v3635_v15 = vpop.xlane.xlu0 %3634 }
 0xd6f   : > { %5311 = vrcp.f32 %v3635_v15 }
 0xd71   : > { %v3644_v16 = vpop.xlane.xlu1 %3643 }
 0xd72   : > { %5313 = vrcp.f32 %v3644_v16  ;;  %v3641_v17 = vpop.xlane.xlu0 %3640 }
 0xd73   : > { %5315 = vrcp.f32 %v3641_v17 }
 0xd75   : > { %v3650_v11 = vpop.xlane.xlu1 %3649 }
 0xd76   : > { %5317 = vrcp.f32 %v3650_v11  ;;  %v3647_v18 = vpop.xlane.xlu0 %3646 }
 0xd77   : > { %5319 = vrcp.f32 %v3647_v18 }
 0xd78   : > { %v5310_v19 = vpop.eup %5309 }
 0xd79   : > { %v5312_v20 = vpop.eup %5311  ;;  %v3656_v21 = vpop.xlane.xlu1 %3655  ;;  %v3666_v9 = vmul.f32 %v5310_v19, %v5294_v57 }
 0xd7a   : > { %5321 = vrcp.f32 %v3656_v21  ;;  %v3653_v22 = vpop.xlane.xlu0 %3652  ;;  %v3665_v23 = vmul.f32 %v5312_v20, %v5296_v1 }
 0xd7b   : > { %5323 = vrcp.f32 %v3653_v22 }
 0xd7c   : > { %v5314_v24 = vpop.eup %5313  ;;  %4931 = vmatprep.mubr.msk.f32.mxu0 %vm1091_vm4, %v3665_v23 }
 0xd7d   : > { %v5316_v25 = vpop.eup %5315  ;;  %4932 = vmatmul.mubr.msk.f32.vlgmr.msra.gmra.mrb[76].mxu0 %vm1091_vm4, %v3666_v9  ;;  %v3668_v27 = vmul.f32 %v5314_v24, %v5298_v62 }
 0xd7e   : > { %v3667_v26 = vmul.f32 %v5316_v25, %v5300_v0 }
 0xd80   : > { %v5318_v28 = vpop.eup %5317  ;;  %4934 = vmatprep.mubr.msk.f32.mxu0 %vm1091_vm4, %v3667_v26 }
 0xd81   : > { %v5320_v29 = vpop.eup %5319  ;;  %4935 = vmatmul.mubr.msk.f32.gmra.mrb[78].mxu0 %vm1091_vm4, %v3668_v27  ;;  %v3670_v32 = vmul.f32 %v5318_v28, %v5302_v8 }
 0xd82   : > { %v3669_v30 = vmul.f32 %v5320_v29, %v5304_v5 }
 0xd84   : > { %v5322_v34 = vpop.eup %5321  ;;  %4937 = vmatprep.mubr.msk.f32.mxu0 %vm1091_vm4, %v3669_v30 }
 0xd85   : > { %v5324_v35 = vpop.eup %5323  ;;  %4938 = vmatmul.mubr.msk.f32.gmra.mrb[80].mxu0 %vm1091_vm4, %v3670_v32  ;;  %v3672_v38 = vmul.f32 %v5322_v34, %v5306_v10 }
 0xd86   : > { %v3671_v36 = vmul.f32 %v5324_v35, %v5308_v13 }
 0xd88   : > { %4940 = vmatprep.mubr.msk.f32.mxu0 %vm1091_vm4, %v3671_v36 }
 0xd89   : > { %4941 = vmatmul.mubr.msk.f32.gmra.mrb[82].mxu0 %vm1091_vm4, %v3672_v38 }
 0xe50   : > { %v4933_v39 = vpop.f32.mrb[76].mxu0 }
 0xe51   : > { %3803 = vst.msk [vmem:[%s5687_s10 + $0xc8] sm:$0xff] %vm828_vm2, %v4933_v39  ;;  %v3763_v41 = vpop.f32.mrb[77].mxu0 }
 0xe52   : > { %3802 = vst.msk [vmem:[%s5687_s10 + $0xc0] sm:$0xff] %vm828_vm2, %v3763_v41 }
 0xe54   : > { %v4936_v31 = vpop.f32.mrb[78].mxu0 }
 0xe55   : > { %3805 = vst.msk [vmem:[%s5687_s10 + $0xd8] sm:$0xff] %vm828_vm2, %v4936_v31  ;;  %v3773_v33 = vpop.f32.mrb[79].mxu0 }
 0xe56   : > { %3804 = vst.msk [vmem:[%s5687_s10 + $0xd0] sm:$0xff] %vm828_vm2, %v3773_v33 }
 0xe58   : > { %v4939_v40 = vpop.f32.mrb[80].mxu0 }
 0xe59   : > { %3807 = vst.msk [vmem:[%s5687_s10 + $0xe8] sm:$0xff] %vm828_vm2, %v4939_v40  ;;  %v3783_v42 = vpop.f32.mrb[81].mxu0 }
 0xe5a   : > { %3806 = vst.msk [vmem:[%s5687_s10 + $0xe0] sm:$0xff] %vm828_vm2, %v3783_v42 }
 0xe5c   : > { %v4942_v46 = vpop.f32.mrb[82].mxu0 }
 0xe5d   : > { %3809 = vst.msk [vmem:[%s5687_s10 + $0xf8] sm:$0xff] %vm828_vm2, %v4942_v46  ;;  %v3793_v49 = vpop.f32.mrb[83].mxu0 }
 0xe5e   : > { %3808 = vst.msk [vmem:[%s5687_s10 + $0xf0] sm:$0xff] %vm828_vm2, %v3793_v49 }
 0xe5f PF: > { %s17_s24 = sadd.s32 1, %s5332_s24  }
 0xe60   : > { %p14_p4 = scmp.ge.s32.totalorder %s17_s24, 4  }
 0xe62   :  { %16 = sbr.rel (!%p14_p4) target bundleno = 1 (0x1), region = 100 }

</bundles_post_ra>
